<compile_context>
chip_gen: v6e
topology: v6e:2x2x1
jax: 0.10.0
libtpu: 0.0.40
codegen_flags: <defaults>
</compile_context>

<pallas_src>
import jax
import jax.numpy as jnp
from jax.experimental import pallas as pl
from jax.experimental.pallas import tpu as pltpu


def _round_up(x, m):
    return ((x + m - 1) // m) * m


def _pick_tile_m(m_total):
    # Small problems: one (or two) 128-row tiles -> minimal padding, and for
    # 128 < M <= 256 the grid has 2 steps so both v7x TensorCores get work.
    # Large problems: 256-row tiles fill the v6e/v7x 256x256 MXU.
    if m_total <= 256:
        return 128
    return 256


def lm_criterion_kernel(h_ref, w_ref, tgt_ref, mask_ref, out_ref):
    """Fused projection + log-softmax + masked-NLL partial sums for one M tile.

    h_ref   : (TILE_M, H)  bf16  teacher-forced hidden states (B*T folded)
    w_ref   : (H, V)       bf16  output projection (resident, single-buffered)
    tgt_ref : (TILE_M, 1)  i32   target token ids
    mask_ref: (TILE_M, 1)  f32   loss mask (0 for padded / past-EOS rows)
    out_ref : (1, 8, 128)  f32   partials: sublane 0 = num, sublane 1 = den
    """
    h = h_ref[...]                                  # (TILE_M, H) bf16
    w = w_ref[...]                                  # (H, V)      bf16
    # MXU matmul with f32 accumulation.
    logits = jnp.dot(h, w, preferred_element_type=jnp.float32)    # (TILE_M, V)

    # Numerically stable log-softmax pieces, single pass over `shifted`:
    # nll = log(sum(exp(shifted))) - shifted[target].
    m = jnp.max(logits, axis=-1, keepdims=True)                   # (TILE_M, 1)
    shifted = logits - m                                          # (TILE_M, V)
    sumexp = jnp.sum(jnp.exp(shifted), axis=-1, keepdims=True)    # (TILE_M, 1)

    # Gather shifted[n, target[n]] via iota-compare + where (VPU/XLU slots,
    # effectively free next to the EUP exp work).
    # NOTE: an out-of-range target id silently picks 0.0 (unlike torch.gather,
    # which would error); ids here are always in [0, V).
    tgt = tgt_ref[...]                                            # (TILE_M, 1) i32
    vocab_ids = jax.lax.broadcasted_iota(jnp.int32, shifted.shape, 1)
    picked = jnp.sum(jnp.where(vocab_ids == tgt, shifted, 0.0),
                     axis=-1, keepdims=True)                      # (TILE_M, 1)

    mask = mask_ref[...]                                          # (TILE_M, 1) f32
    nll = jnp.log(sumexp) - picked                                # -logprob(target)
    num = jnp.sum(mask * nll)          # partial  -sum(mask * logprob_tgt)
    den = jnp.sum(mask)                # partial   sum(mask)

    # Lane-dense, unmasked (8, 128) store of the two scalars.
    sub = jax.lax.broadcasted_iota(jnp.int32, out_ref.shape, 1)
    out_ref[...] = jnp.where(sub == 0, num, jnp.where(sub == 1, den, 0.0))


def language_model_criterion(h, w_out, targets, mask, *, tile_m):
    """h:(M_pad,H) bf16, w_out:(H,V), targets:(M_pad,1) i32, mask:(M_pad,1) f32."""
    M_pad, H = h.shape
    V = w_out.shape[1]
    assert M_pad % tile_m == 0 and tile_m % 8 == 0
    n_m = M_pad // tile_m

    w_bf16 = w_out.astype(jnp.bfloat16)

    def build_call(w_spec):
        return pl.pallas_call(
            lm_criterion_kernel,
            out_shape=jax.ShapeDtypeStruct((n_m, 8, 128), jnp.float32),
            grid=(n_m,),
            in_specs=[
                pl.BlockSpec((tile_m, H), lambda m: (m, 0)),
                w_spec,                                            # resident weight
                pl.BlockSpec((tile_m, 1), lambda m: (m, 0)),
                pl.BlockSpec((tile_m, 1), lambda m: (m, 0)),
            ],
            out_specs=pl.BlockSpec((1, 8, 128), lambda m: (m, 0, 0)),
            compiler_params=pltpu.CompilerParams(
                dimension_semantics=("parallel",),
                vmem_limit_bytes=32 * 1024 * 1024,
            ),
            cost_estimate=pl.CostEstimate(
                flops=2 * M_pad * H * V,
                transcendentals=M_pad * V,
                bytes_accessed=(h.size * 2 + H * V * 2
                                + targets.size * 4 + mask.size * 4
                                + n_m * 8 * 128 * 4),
            ),
        )

    try:
        # Constant index_map -> no need to double-buffer the weight: halves its
        # VMEM footprint (matters for real LM-head sizes, esp. v7x's 64 MiB).
        w_spec = pl.BlockSpec((H, V), lambda m: (0, 0),
                              pipeline_mode=pl.Buffered(1))
        partials = build_call(w_spec)(h, w_bf16, targets, mask)
    except Exception:
        # Fallback for jax builds without pipeline_mode / Buffered(1) support.
        w_spec = pl.BlockSpec((H, V), lambda m: (0, 0))
        partials = build_call(w_spec)(h, w_bf16, targets, mask)

    # Tiny final reduction + division outside the kernel (keeps the grid fully
    # parallel; NaN if sum(mask)==0, same as the torch criterion).
    num = jnp.sum(partials[:, 0, 0])
    den = jnp.sum(partials[:, 1, 0])
    return num / den


class LossWrapperPallas:
    """JAX/Pallas re-implementation of LossWrapper.forward (sc_flag=False)."""

    def __init__(self, key, vocab_size=128, hidden=32, d_fc=32, d_att=32):
        k1, k2, k3, k4 = jax.random.split(key, 4)
        self.V = vocab_size
        self.H = hidden
        # Deterministic synthetic "model" parameters.
        self.w_emb = jax.random.normal(k1, (vocab_size, hidden), jnp.float32) * 0.02
        self.w_fc = jax.random.normal(k2, (d_fc, hidden), jnp.float32) * 0.02
        self.w_att = jax.random.normal(k3, (d_att, hidden), jnp.float32) * 0.02
        self.w_out = jax.random.normal(k4, (hidden, vocab_size), jnp.float32) * 0.02

    def _hidden_bias(self, fc_feats, att_feats, att_masks):
        fc_h = fc_feats @ self.w_fc                                # (B, H)
        att_mean = jnp.sum(att_feats * att_masks[..., None], axis=1) / (
            jnp.sum(att_masks, axis=1, keepdims=True) + 1e-8)      # (B, D_att)
        att_h = att_mean @ self.w_att                              # (B, H)
        return fc_h + att_h                                        # (B, H)

    def _model_hidden_rows(self, inputs_flat, batch_idx, bias):
        # Teacher-forced hidden states, one row per (batch, timestep) — produced
        # directly at the padded/folded length (no post-hoc HBM re-copy of h).
        emb = self.w_emb[inputs_flat]                              # (M_pad, H)
        h = jnp.tanh(emb + bias[batch_idx])                        # (M_pad, H)
        return h.astype(jnp.bfloat16)    # activations go to the MXU in bf16

    def forward(self, fc_feats, att_feats, labels, box_logits, att_relscore,
                masks, att_masks, gts=None, data=None, sc_flag=False,
                tile_m=None):
        out = {}
        if sc_flag:
            # TODO(synk): sc_flag branch (sampling + self-critical reward) omitted.
            raise NotImplementedError(
                "sc_flag=True (self-critical RL) path not implemented")

        B, L = labels.shape
        T = L - 1
        M = B * T
        if tile_m is None:
            tile_m = _pick_tile_m(M)
        M_pad = _round_up(M, tile_m)
        pad = M_pad - M

        # Fold (batch, time) into one M axis and pad the cheap token / mask /
        # batch-index streams; h is then produced directly at (M_pad, H).
        inputs = jnp.pad(labels[:, :-1].astype(jnp.int32).reshape(-1), (0, pad))
        targets = jnp.pad(labels[:, 1:].astype(jnp.int32).reshape(-1), (0, pad))
        mask = jnp.pad(masks[:, 1:].astype(jnp.float32).reshape(-1), (0, pad))
        batch_idx = jnp.pad(
            jnp.repeat(jnp.arange(B, dtype=jnp.int32), T), (0, pad))
        # Padded rows reuse token/batch 0; correctness relies on their mask == 0.

        bias = self._hidden_bias(fc_feats, att_feats, att_masks)    # (B, H)
        h = self._model_hidden_rows(inputs, batch_idx, bias)        # (M_pad, H)

        loss = language_model_criterion(
            h, self.w_out, targets[:, None], mask[:, None], tile_m=tile_m)
        out["loss"] = loss
        out["reward"] = 0
        return out


def _reference_loss(wrapper, fc_feats, att_feats, labels, masks, att_masks):
    """Pure-JAX reference (same bf16 quantization of the matmul inputs)."""
    inputs = labels[:, :-1].astype(jnp.int32)
    bias = wrapper._hidden_bias(fc_feats, att_feats, att_masks)     # (B, H)
    h = jnp.tanh(wrapper.w_emb[inputs] + bias[:, None, :]).astype(jnp.bfloat16)
    w = wrapper.w_out.astype(jnp.bfloat16)
    logits = jnp.dot(h.astype(jnp.float32), w.astype(jnp.float32),
                     precision=jax.lax.Precision.HIGHEST)
    logprobs = jax.nn.log_softmax(logits, axis=-1)
    targets = labels[:, 1:]
    mask = masks[:, 1:].astype(jnp.float32)
    picked = jnp.take_along_axis(logprobs, targets[..., None], axis=-1)[..., 0]
    return -jnp.sum(picked * mask) / jnp.sum(mask)


if __name__ == "__main__":
    key = jax.random.PRNGKey(0)
    k_param, k_fc, k_att, k_lab, k_len = jax.random.split(key, 5)

    B, A, D_fc, D_att = 2, 6, 32, 32
    V, H = 128, 32
    L = 8                       # labels length -> T = 7 prediction steps

    wrapper = LossWrapperPallas(k_param, vocab_size=V, hidden=H,
                                d_fc=D_fc, d_att=D_att)

    fc_feats = jax.random.normal(k_fc, (B, D_fc), jnp.float32)
    att_feats = jax.random.normal(k_att, (B, A, D_att), jnp.float32)
    labels = jax.random.randint(k_lab, (B, L), 1, V).astype(jnp.int32)
    labels = labels.at[:, 0].set(0)                  # BOS token = 0
    # Sequence masks: first sequence full length, second shorter.
    masks = jnp.ones((B, L), jnp.float32)
    masks = masks.at[1, 6:].set(0.0)
    att_masks = jnp.ones((B, A), jnp.float32)
    box_logits = jnp.zeros((B, A, 4), jnp.float32)   # unused by criterion path
    att_relscore = jnp.zeros((B, A), jnp.float32)    # unused by criterion path

    out = wrapper.forward(fc_feats, att_feats, labels, box_logits, att_relscore,
                          masks, att_masks, sc_flag=False)
    loss = jax.block_until_ready(out["loss"])

    ref = _reference_loss(wrapper, fc_feats, att_feats, labels, masks, att_masks)
    assert jnp.isfinite(loss), loss
    assert jnp.allclose(loss, ref, rtol=1e-4, atol=1e-4), (loss, ref)

    print("KERNEL_OK")
</pallas_src>

<mosaic_0001>
module attributes {stable_mosaic.version = 11 : i64} {
  func.func @lm_criterion_kernel(%arg0: i32, %arg1: memref<128x32xbf16, #tpu.memory_space<vmem>>, %arg2: memref<32x128xbf16, #tpu.memory_space<vmem>>, %arg3: memref<128x1xi32, #tpu.memory_space<vmem>>, %arg4: memref<128x1xf32, #tpu.memory_space<vmem>>, %arg5: memref<1x8x128xf32, #tpu.memory_space<vmem>>) attributes {dimension_semantics = [#tpu.dimension_semantics<parallel>], iteration_bounds = array<i64: 1>, scalar_prefetch = 0 : i64, scratch_operands = 0 : i64, tpu.core_type = #tpu.core_type<tc>, window_params = [{transform_indices = @transform_0, window_bounds = array<i64: 128, 32>}, {pipeline_mode = #tpu.pipeline_mode<synchronous>, transform_indices = @transform_1, window_bounds = array<i64: 32, 128>}, {transform_indices = @transform_2, window_bounds = array<i64: 128, 1>}, {transform_indices = @transform_3, window_bounds = array<i64: 128, 1>}, {transform_indices = @transform_4, window_bounds = array<i64: 1, 8, 128>}]} {
    %c0 = arith.constant 0 : index
    %c0_0 = arith.constant 0 : index
    %0 = vector.load %arg1[%c0, %c0_0] : memref<128x32xbf16, #tpu.memory_space<vmem>>, vector<128x32xbf16>
    %c0_1 = arith.constant 0 : index
    %c0_2 = arith.constant 0 : index
    %1 = vector.load %arg2[%c0_1, %c0_2] : memref<32x128xbf16, #tpu.memory_space<vmem>>, vector<32x128xbf16>
    %cst = arith.constant dense<0.000000e+00> : vector<128x128xf32>
    %2 = tpu.matmul %0, %1, %cst {dimension_numbers = #tpu.dot_dimension_numbers<[1], [0], [0], [1], [0, 0, 1, 1], [], []>} : vector<128x32xbf16>, vector<32x128xbf16>, vector<128x128xf32> -> vector<128x128xf32>
    %cst_3 = arith.constant dense<0xFF800000> : vector<128xf32>
    %3 = vector.multi_reduction <maximumf>, %2, %cst_3 [1] : vector<128x128xf32> to vector<128xf32>
    %4 = vector.shape_cast %3 : vector<128xf32> to vector<128x1xf32>
    %5 = vector.broadcast %4 : vector<128x1xf32> to vector<128x128xf32>
    %6 = arith.subf %2, %5 : vector<128x128xf32>
    %7 = math.exp %6 : vector<128x128xf32>
    %cst_4 = arith.constant dense<0.000000e+00> : vector<128xf32>
    %8 = vector.multi_reduction <add>, %7, %cst_4 [1] : vector<128x128xf32> to vector<128xf32>
    %9 = vector.shape_cast %8 : vector<128xf32> to vector<128x1xf32>
    %c0_5 = arith.constant 0 : index
    %c0_6 = arith.constant 0 : index
    %10 = vector.load %arg3[%c0_5, %c0_6] : memref<128x1xi32, #tpu.memory_space<vmem>>, vector<128x1xi32>
    %11 = tpu.iota {dimensions = array<i32: 1>} : vector<128x128xi32>
    %12 = vector.broadcast %10 : vector<128x1xi32> to vector<128x128xi32>
    %13 = arith.cmpi eq, %11, %12 : vector<128x128xi32>
    %cst_7 = arith.constant 0.000000e+00 : f32
    %14 = vector.broadcast %cst_7 : f32 to vector<128x128xf32>
    %15 = arith.select %13, %6, %14 : vector<128x128xi1>, vector<128x128xf32>
    %cst_8 = arith.constant dense<0.000000e+00> : vector<128xf32>
    %16 = vector.multi_reduction <add>, %15, %cst_8 [1] : vector<128x128xf32> to vector<128xf32>
    %17 = vector.shape_cast %16 : vector<128xf32> to vector<128x1xf32>
    %c0_9 = arith.constant 0 : index
    %c0_10 = arith.constant 0 : index
    %18 = vector.load %arg4[%c0_9, %c0_10] : memref<128x1xf32, #tpu.memory_space<vmem>>, vector<128x1xf32>
    %19 = math.log %9 : vector<128x1xf32>
    %20 = arith.subf %19, %17 : vector<128x1xf32>
    %21 = arith.mulf %18, %20 : vector<128x1xf32>
    %22 = vector.shape_cast %21 : vector<128x1xf32> to vector<1x128x1xf32>
    %cst_11 = arith.constant dense<0.000000e+00> : vector<1xf32>
    %23 = vector.multi_reduction <add>, %22, %cst_11 [1, 2] : vector<1x128x1xf32> to vector<1xf32>
    %24 = vector.shape_cast %23 : vector<1xf32> to vector<1x1x1xf32>
    %25 = vector.extract %24[0, 0, 0] : f32 from vector<1x1x1xf32>
    %26 = vector.shape_cast %18 : vector<128x1xf32> to vector<1x128x1xf32>
    %cst_12 = arith.constant dense<0.000000e+00> : vector<1xf32>
    %27 = vector.multi_reduction <add>, %26, %cst_12 [1, 2] : vector<1x128x1xf32> to vector<1xf32>
    %28 = vector.shape_cast %27 : vector<1xf32> to vector<1x1x1xf32>
    %29 = vector.extract %28[0, 0, 0] : f32 from vector<1x1x1xf32>
    %30 = tpu.iota {dimensions = array<i32: 1>} : vector<1x8x128xi32>
    %c0_i32 = arith.constant 0 : i32
    %31 = vector.broadcast %c0_i32 : i32 to vector<1x8x128xi32>
    %32 = arith.cmpi eq, %30, %31 : vector<1x8x128xi32>
    %c1_i32 = arith.constant 1 : i32
    %33 = vector.broadcast %c1_i32 : i32 to vector<1x8x128xi32>
    %34 = arith.cmpi eq, %30, %33 : vector<1x8x128xi32>
    %cst_13 = arith.constant 0.000000e+00 : f32
    %35 = vector.broadcast %29 : f32 to vector<1x8x128xf32>
    %36 = vector.broadcast %cst_13 : f32 to vector<1x8x128xf32>
    %37 = arith.select %34, %35, %36 : vector<1x8x128xi1>, vector<1x8x128xf32>
    %38 = vector.broadcast %25 : f32 to vector<1x8x128xf32>
    %39 = arith.select %32, %38, %37 : vector<1x8x128xi1>, vector<1x8x128xf32>
    %c0_14 = arith.constant 0 : index
    %c0_15 = arith.constant 0 : index
    %c0_16 = arith.constant 0 : index
    %40 = vector.load %arg5[%c0_14, %c0_15, %c0_16] : memref<1x8x128xf32, #tpu.memory_space<vmem>>, vector<1x8x128xf32>
    tpu.vector_store %arg5[%c0_14, %c0_15, %c0_16], %39 {strides = array<i32>} : memref<1x8x128xf32, #tpu.memory_space<vmem>>, vector<1x8x128xf32>,
    return
  }
  func.func @transform_0(%arg0: i32) -> (i32, i32) {
    %c0_i32 = arith.constant 0 : i32
    %c0_i32_0 = arith.constant 0 : i32
    return %arg0, %c0_i32 : i32, i32
  }
  func.func @transform_1(%arg0: i32) -> (i32, i32) {
    %c0_i32 = arith.constant 0 : i32
    %c0_i32_0 = arith.constant 0 : i32
    %c0_i32_1 = arith.constant 0 : i32
    return %c0_i32, %c0_i32_0 : i32, i32
  }
  func.func @transform_2(%arg0: i32) -> (i32, i32) {
    %c0_i32 = arith.constant 0 : i32
    %c0_i32_0 = arith.constant 0 : i32
    return %arg0, %c0_i32 : i32, i32
  }
  func.func @transform_3(%arg0: i32) -> (i32, i32) {
    %c0_i32 = arith.constant 0 : i32
    %c0_i32_0 = arith.constant 0 : i32
    return %arg0, %c0_i32 : i32, i32
  }
  func.func @transform_4(%arg0: i32) -> (i32, i32, i32) {
    %c0_i32 = arith.constant 0 : i32
    %c0_i32_0 = arith.constant 0 : i32
    %c0_i32_1 = arith.constant 0 : i32
    return %arg0, %c0_i32, %c0_i32_0 : i32, i32, i32
  }
}

module attributes {stable_mosaic.version = 11 : i64} {
  func.func @lm_criterion_kernel(%arg0: i32, %arg1: memref<128x32xbf16, #tpu.memory_space<vmem>>, %arg2: memref<32x128xbf16, #tpu.memory_space<vmem>>, %arg3: memref<128x1xi32, #tpu.memory_space<vmem>>, %arg4: memref<128x1xf32, #tpu.memory_space<vmem>>, %arg5: memref<1x8x128xf32, #tpu.memory_space<vmem>>) attributes {dimension_semantics = [#tpu.dimension_semantics<parallel>], iteration_bounds = array<i64: 1>, scalar_prefetch = 0 : i64, scratch_operands = 0 : i64, tpu.core_type = #tpu.core_type<tc>, window_params = [{transform_indices = @transform_0, window_bounds = array<i64: 128, 32>}, {pipeline_mode = #tpu.pipeline_mode<synchronous>, transform_indices = @transform_1, window_bounds = array<i64: 32, 128>}, {transform_indices = @transform_2, window_bounds = array<i64: 128, 1>}, {transform_indices = @transform_3, window_bounds = array<i64: 128, 1>}, {transform_indices = @transform_4, window_bounds = array<i64: 1, 8, 128>}]} {
    %c0 = arith.constant 0 : index
    %c0_0 = arith.constant 0 : index
    %0 = vector.load %arg1[%c0, %c0_0] : memref<128x32xbf16, #tpu.memory_space<vmem>>, vector<128x32xbf16>
    %c0_1 = arith.constant 0 : index
    %c0_2 = arith.constant 0 : index
    %1 = vector.load %arg2[%c0_1, %c0_2] : memref<32x128xbf16, #tpu.memory_space<vmem>>, vector<32x128xbf16>
    %cst = arith.constant dense<0.000000e+00> : vector<128x128xf32>
    %2 = tpu.matmul %0, %1, %cst {dimension_numbers = #tpu.dot_dimension_numbers<[1], [0], [0], [1], [0, 0, 1, 1], [], []>} : vector<128x32xbf16>, vector<32x128xbf16>, vector<128x128xf32> -> vector<128x128xf32>
    %cst_3 = arith.constant dense<0xFF800000> : vector<128xf32>
    %3 = vector.multi_reduction <maximumf>, %2, %cst_3 [1] : vector<128x128xf32> to vector<128xf32>
    %4 = vector.shape_cast %3 : vector<128xf32> to vector<128x1xf32>
    %5 = vector.broadcast %4 : vector<128x1xf32> to vector<128x128xf32>
    %6 = arith.subf %2, %5 : vector<128x128xf32>
    %7 = math.exp %6 : vector<128x128xf32>
    %cst_4 = arith.constant dense<0.000000e+00> : vector<128xf32>
    %8 = vector.multi_reduction <add>, %7, %cst_4 [1] : vector<128x128xf32> to vector<128xf32>
    %9 = vector.shape_cast %8 : vector<128xf32> to vector<128x1xf32>
    %c0_5 = arith.constant 0 : index
    %c0_6 = arith.constant 0 : index
    %10 = vector.load %arg3[%c0_5, %c0_6] : memref<128x1xi32, #tpu.memory_space<vmem>>, vector<128x1xi32>
    %11 = tpu.iota {dimensions = array<i32: 1>} : vector<128x128xi32>
    %12 = vector.broadcast %10 : vector<128x1xi32> to vector<128x128xi32>
    %13 = arith.cmpi eq, %11, %12 : vector<128x128xi32>
    %cst_7 = arith.constant 0.000000e+00 : f32
    %14 = vector.broadcast %cst_7 : f32 to vector<128x128xf32>
    %15 = arith.select %13, %6, %14 : vector<128x128xi1>, vector<128x128xf32>
    %cst_8 = arith.constant dense<0.000000e+00> : vector<128xf32>
    %16 = vector.multi_reduction <add>, %15, %cst_8 [1] : vector<128x128xf32> to vector<128xf32>
    %17 = vector.shape_cast %16 : vector<128xf32> to vector<128x1xf32>
    %c0_9 = arith.constant 0 : index
    %c0_10 = arith.constant 0 : index
    %18 = vector.load %arg4[%c0_9, %c0_10] : memref<128x1xf32, #tpu.memory_space<vmem>>, vector<128x1xf32>
    %19 = math.log %9 : vector<128x1xf32>
    %20 = arith.subf %19, %17 : vector<128x1xf32>
    %21 = arith.mulf %18, %20 : vector<128x1xf32>
    %22 = vector.shape_cast %21 : vector<128x1xf32> to vector<1x128x1xf32>
    %cst_11 = arith.constant dense<0.000000e+00> : vector<1xf32>
    %23 = vector.multi_reduction <add>, %22, %cst_11 [1, 2] : vector<1x128x1xf32> to vector<1xf32>
    %24 = vector.shape_cast %23 : vector<1xf32> to vector<1x1x1xf32>
    %25 = vector.extract %24[0, 0, 0] : f32 from vector<1x1x1xf32>
    %26 = vector.shape_cast %18 : vector<128x1xf32> to vector<1x128x1xf32>
    %cst_12 = arith.constant dense<0.000000e+00> : vector<1xf32>
    %27 = vector.multi_reduction <add>, %26, %cst_12 [1, 2] : vector<1x128x1xf32> to vector<1xf32>
    %28 = vector.shape_cast %27 : vector<1xf32> to vector<1x1x1xf32>
    %29 = vector.extract %28[0, 0, 0] : f32 from vector<1x1x1xf32>
    %30 = tpu.iota {dimensions = array<i32: 1>} : vector<1x8x128xi32>
    %c0_i32 = arith.constant 0 : i32
    %31 = vector.broadcast %c0_i32 : i32 to vector<1x8x128xi32>
    %32 = arith.cmpi eq, %30, %31 : vector<1x8x128xi32>
    %c1_i32 = arith.constant 1 : i32
    %33 = vector.broadcast %c1_i32 : i32 to vector<1x8x128xi32>
    %34 = arith.cmpi eq, %30, %33 : vector<1x8x128xi32>
    %cst_13 = arith.constant 0.000000e+00 : f32
    %35 = vector.broadcast %29 : f32 to vector<1x8x128xf32>
    %36 = vector.broadcast %cst_13 : f32 to vector<1x8x128xf32>
    %37 = arith.select %34, %35, %36 : vector<1x8x128xi1>, vector<1x8x128xf32>
    %38 = vector.broadcast %25 : f32 to vector<1x8x128xf32>
    %39 = arith.select %32, %38, %37 : vector<1x8x128xi1>, vector<1x8x128xf32>
    %c0_14 = arith.constant 0 : index
    %c0_15 = arith.constant 0 : index
    %c0_16 = arith.constant 0 : index
    %40 = vector.load %arg5[%c0_14, %c0_15, %c0_16] : memref<1x8x128xf32, #tpu.memory_space<vmem>>, vector<1x8x128xf32>
    tpu.vector_store %arg5[%c0_14, %c0_15, %c0_16], %39 {strides = array<i32>} : memref<1x8x128xf32, #tpu.memory_space<vmem>>, vector<1x8x128xf32>,
    return
  }
  func.func @transform_0(%arg0: i32) -> (i32, i32) {
    %c0_i32 = arith.constant 0 : i32
    %c0_i32_0 = arith.constant 0 : i32
    return %arg0, %c0_i32 : i32, i32
  }
  func.func @transform_1(%arg0: i32) -> (i32, i32) {
    %c0_i32 = arith.constant 0 : i32
    %c0_i32_0 = arith.constant 0 : i32
    %c0_i32_1 = arith.constant 0 : i32
    return %c0_i32, %c0_i32_0 : i32, i32
  }
  func.func @transform_2(%arg0: i32) -> (i32, i32) {
    %c0_i32 = arith.constant 0 : i32
    %c0_i32_0 = arith.constant 0 : i32
    return %arg0, %c0_i32 : i32, i32
  }
  func.func @transform_3(%arg0: i32) -> (i32, i32) {
    %c0_i32 = arith.constant 0 : i32
    %c0_i32_0 = arith.constant 0 : i32
    return %arg0, %c0_i32 : i32, i32
  }
  func.func @transform_4(%arg0: i32) -> (i32, i32, i32) {
    %c0_i32 = arith.constant 0 : i32
    %c0_i32_0 = arith.constant 0 : i32
    %c0_i32_1 = arith.constant 0 : i32
    return %arg0, %c0_i32, %c0_i32_0 : i32, i32, i32
  }
}

</mosaic_0001>

<bundles_post_ra>
// kernel: tpu_custom_call.1
= control target key start
LH: loop header
LB: loop body
LE: loop exit
PB: predicated region body
PF: predicated region fallthrough
CT: control target
= control target key end

     0   :  { %vm91_vm0 = vcmask 261120   ;;  %v795_v6 = vmov 0   ;;  %s1181_s0 = inlined_call_operand.vmem [shape: bf16[128,32], index: 0, kind: input, shape index: {}]   ;;  %s1182_s1 = inlined_call_operand.vmem [shape: bf16[32,128], index: 1, kind: input, shape index: {}]   ;;  %s1183_s2 = inlined_call_operand.vmem [shape: s32[128,1], index: 2, kind: input, shape index: {}]   ;;  %s1184_s3 = inlined_call_operand.vmem [shape: f32[128,1], index: 3, kind: input, shape index: {}]   ;;  %s1185_s4 = inlined_call_operand.hbm [shape: f32[1,8,128], index: 4, kind: output, shape index: {}]  }
   0x1   :  { %v699_v0 = vld [vmem:[%s1182_s1 + $0x8] sm:$0xff]   ;;  %v700_v1 = vld [vmem:[%s1182_s1] sm:$0xff]   ;;  %698 = vset.pattern.permute.xlu1 %v795_v6  ;;  %697 = vset.pattern.permute.xlu0 %v795_v6  ;;  %v705_v7 = vld [vmem:[%s1181_s0 + $0x10] sm:$0xff]  }
   0x2   :  { %667 = vmatprep.subr.bf16.mxu0 %v699_v0  ;;  %687 = vmatprep.subr.bf16.mxu1 %v699_v0  ;;  %v701_v2 = vld [vmem:[%s1181_s0] sm:$0xff]   ;;  %v703_v4 = vld [vmem:[%s1181_s0 + $0x8] sm:$0xff]   ;;  %v707_v8 = vld [vmem:[%s1181_s0 + $0x30] sm:$0xff]  }
   0x3   :  { %668 = vmatpush3.bf16.msra.mxu0 %v699_v0  ;;  %689 = vmatpush3.bf16.msra.mxu1 %v699_v0  ;;  %v702_v3 = vld [vmem:[%s1181_s0 + $0x20] sm:$0xff]   ;;  %v704_v5 = vld [vmem:[%s1181_s0 + $0x28] sm:$0xff]   ;;  %v327_v10 = vld [vmem:[%s1183_s2 + $0x10] sm:$0xff] }
   0x4   :  { %669 = vmatprep.subr.bf16.mxu0 %v700_v1  ;;  %688 = vmatprep.subr.bf16.mxu1 %v700_v1  ;;  %v326_v9 = vld [vmem:[%s1183_s2 + $0x8] sm:$0xff]  ;;  %v325_v11 = vld [vmem:[%s1183_s2] sm:$0xff]  ;;  %v706_v12 = vld [vmem:[%s1181_s0 + $0x18] sm:$0xff]  }
   0x5   :  { %671 = vmatprep.mubr.msk.bf16.mxu0 %vm91_vm0, %v701_v2  ;;  %679 = vmatprep.mubr.msk.bf16.mxu1 %vm91_vm0, %v702_v3  ;;  %v708_v13 = vld [vmem:[%s1181_s0 + $0x38] sm:$0xff]  }
   0x6   :  { %347 = vperm.xlu1 %698, %v326_v9   ;;  %344 = vperm.xlu0 %697, %v325_v11  }
   0x7   :  { %670 = vmatpush3.bf16.msra.mxu0 %v700_v1  ;;  %690 = vmatpush3.bf16.msra.mxu1 %v700_v1 }
   0xa   :  { %672 = vmatmul.mubr.msk.bf16.vlgmr.msra.gmra.mxu0 %vm91_vm0, %v703_v4  ;;  %680 = vmatmul.mubr.msk.bf16.vlgmr.msra.gmra.mxu1 %vm91_vm0, %v704_v5 }
   0xb   :  { %675 = vmatprep.mubr.msk.bf16.mxu0 %vm91_vm0, %v705_v7  ;;  %683 = vmatprep.mubr.msk.bf16.mxu1 %vm91_vm0, %v707_v8 }
   0xc   :  { %9 = vsyncpa [#allocation3], 0  ;;  %350 = vperm.xlu1 %698, %v327_v10   ;;  %v334_v14 = vld [vmem:[%s1183_s2 + $0x48] sm:$0xff]  ;;  %v328_v15 = vld [vmem:[%s1183_s2 + $0x18] sm:$0xff]  ;;  %v341_v53 = vlaneseq  ;;  %vm535_vm14 = vcmask 7168   ;;  %s796_s14 = smov [#allocation2]  }
   0xd   :  { %371 = vperm.xlu0 %697, %v334_v14   ;;  %v336_v16 = vld [vmem:[%s1183_s2 + $0x58] sm:$0xff]  ;;  %v329_v17 = vld [vmem:[%s1183_s2 + $0x20] sm:$0xff]  ;;  %v330_v18 = vld [vmem:[%s1183_s2 + $0x28] sm:$0xff]  ;;  %s631_s15 = sshll.u32 %s796_s14, 4  ;;  %s632_s15 = int_to_ptr.vmem [resolvable:$true] %s631_s15 }
   0xe   :  { %v331_v19 = vld [vmem:[%s1183_s2 + $0x30] sm:$0xff]  ;;  %v332_v20 = vld [vmem:[%s1183_s2 + $0x38] sm:$0xff]  ;;  %v333_v21 = vld [vmem:[%s1183_s2 + $0x40] sm:$0xff]  ;;  %v961_v56 = vand.u32 127, %v341_v53  ;;  %s773_s17 = scalar_lea.vmem %s632_s15, 128  ;;  %p778_p1 = scmp.lt.s32.totalorder %s632_s15, %s632_s15 }
   0xf   :  { %v335_v22 = vld [vmem:[%s1183_s2 + $0x50] sm:$0xff]  ;;  %v337_v38 = vld [vmem:[%s1183_s2 + $0x60] sm:$0xff]  ;;  %v338_v39 = vld [vmem:[%s1183_s2 + $0x68] sm:$0xff]  ;;  %p774_p0 = scmp.ne.s32.totalorder %s632_s15, %s773_s17  ;;  %p779_p2 = scmp.lt.s32.totalorder %s773_s17, %s773_s17 }
  0x10   :  { %353 = vperm.xlu1 %698, %v328_v15   ;;  %v340_v40 = vld [vmem:[%s1183_s2 + $0x78] sm:$0xff]  ;;  %v339_v44 = vld [vmem:[%s1183_s2 + $0x70] sm:$0xff] }
  0x11   :  { %377 = vperm.xlu0 %697, %v336_v16   ;;  %p780_p3 = por %p779_p2, %p778_p1 }
  0x12   :  { %676 = vmatmul.mubr.msk.bf16.gmra.mxu0 %vm91_vm0, %v706_v12  ;;  %684 = vmatmul.mubr.msk.bf16.gmra.mxu1 %vm91_vm0, %v708_v13 }
  0x13   :  { %p781_p4 = pnand %p780_p3, %p774_p0 }
  0x14   :  { %356 = vperm.xlu1 %698, %v329_v17  }
  0x18   :  { %359 = vperm.xlu1 %698, %v330_v18  }
  0x1c   :  { %362 = vperm.xlu1 %698, %v331_v19  }
  0x20   :  { %365 = vperm.xlu1 %698, %v332_v20  }
  0x24   :  { %368 = vperm.xlu1 %698, %v333_v21  }
  0x28   :  { %374 = vperm.xlu1 %698, %v335_v22  }
  0x81   :  { %v348_v42 = vpop.permute.xlu1 %347  ;;  %v345_v50 = vpop.permute.xlu0 %344 }
  0x82   :  { %vm391_vm2 = vcmp.eq.s32.totalorder %v961_v56, %v345_v50  ;;  %vm392_vm4 = vcmp.eq.s32.totalorder %v961_v56, %v348_v42 }
  0x87   :  { %v351_v43 = vpop.permute.xlu1 %350 }
  0x88   :  { %v954_v52 = vpop.permute.xlu0 %371  ;;  %vm393_vm1 = vcmp.eq.s32.totalorder %v961_v56, %v351_v43 }
  0x89   :  { %vm400_vm10 = vcmp.eq.s32.totalorder %v961_v56, %v954_v52 }
  0x8b   :  { %v944_v45 = vpop.permute.xlu1 %353 }
  0x8c   :  { %v958_v55 = vpop.permute.xlu0 %377  ;;  %vm394_vm5 = vcmp.eq.s32.totalorder %v961_v56, %v944_v45 }
  0x8d   :  { %vm402_vm11 = vcmp.eq.s32.totalorder %v961_v56, %v958_v55  ;;  %v1028_v55 = vld [vmem:[%s1184_s3] sm:$0xff] }
  0x8f   :  { %v946_v46 = vpop.permute.xlu1 %356 }
  0x90   :  { %vm395_vm6 = vcmp.eq.s32.totalorder %v961_v56, %v946_v46 }
  0x93   :  { %v948_v47 = vpop.permute.xlu1 %359 }
  0x94   :  { %vm396_vm7 = vcmp.eq.s32.totalorder %v961_v56, %v948_v47 }
  0x97   :  { %v950_v48 = vpop.permute.xlu1 %362 }
  0x98   :  { %vm397_vm8 = vcmp.eq.s32.totalorder %v961_v56, %v950_v48 }
  0x9b   :  { %v952_v49 = vpop.permute.xlu1 %365 }
  0x9c   :  { %vm398_vm9 = vcmp.eq.s32.totalorder %v961_v56, %v952_v49 }
  0x9f   :  { %v369_v51 = vpop.permute.xlu1 %368 }
  0xa0   :  { %vm399_vm3 = vcmp.eq.s32.totalorder %v961_v56, %v369_v51 }
  0xa3   :  { %v956_v54 = vpop.permute.xlu1 %374 }
  0xa4   :  { %vm401_vm15 = vcmp.eq.s32.totalorder %v961_v56, %v956_v54  ;;  %v1091_v54 = vld [vmem:[%s1184_s3 + $0x48] sm:$0xff] }
  0xca   :  { %v673_v23 = vpop.f32.mrf.mxu0  ;;  %v681_v24 = vpop.f32.mrf.mxu1 }
  0xcb   :  { %233 = vmax.xlane.f32.xlu0 %v681_v24  ;;  %217 = vmax.xlane.f32.xlu1 %v673_v23 }
  0xcc   :  { %v150_v25 = vpop.f32.mrf.mxu0  ;;  %v896_v26 = vpop.f32.mrf.mxu1 }
  0xce   :  { %v674_v27 = vpop.f32.mrf.mxu0  ;;  %v898_v28 = vpop.f32.mrf.mxu1 }
  0xcf   :  { %213 = vmax.xlane.f32.xlu0 %v150_v25  ;;  %219 = vmax.xlane.f32.xlu1 %v674_v27 }
  0xd0   :  { %v900_v29 = vpop.f32.mrf.mxu0  ;;  %v906_v31 = vpop.f32.mrf.mxu1 }
  0xd2   :  { %v902_v30 = vpop.f32.mrf.mxu0  ;;  %v910_v33 = vpop.f32.mrf.mxu1 }
  0xd3   :  { %229 = vmax.xlane.f32.xlu0 %v896_v26  ;;  %235 = vmax.xlane.f32.xlu1 %v898_v28 }
  0xd4   :  { %v908_v32 = vpop.f32.mrf.mxu0  ;;  %v916_v35 = vpop.f32.mrf.mxu1 }
  0xd6   :  { %v914_v34 = vpop.f32.mrf.mxu0  ;;  %v920_v36 = vpop.f32.mrf.mxu1 }
  0xd7   :  { %231 = vmax.xlane.f32.xlu1 %v906_v31  ;;  %215 = vmax.xlane.f32.xlu0 %v900_v29 }
  0xd8   :  { %v924_v37 = vpop.f32.mrf.mxu0  ;;  %v938_v41 = vpop.f32.mrf.mxu1 }
  0xdb   :  { %225 = vmax.xlane.f32.xlu0 %v902_v30  ;;  %227 = vmax.xlane.f32.xlu1 %v914_v34 }
  0xdf   :  { %241 = vmax.xlane.f32.xlu0 %v910_v33  ;;  %243 = vmax.xlane.f32.xlu1 %v920_v36 }
  0xe3   :  { %221 = vmax.xlane.f32.xlu0 %v908_v32  ;;  %223 = vmax.xlane.f32.xlu1 %v924_v37 }
  0xe7   :  { %237 = vmax.xlane.f32.xlu0 %v916_v35 }
  0xf4   :  { %380 = vperm.xlu1 %698, %v337_v38  }
  0xfd   :  { %383 = vperm.xlu0 %697, %v338_v39  }
 0x101   :  { %389 = vperm.xlu0 %697, %v340_v40  }
 0x118   :  { %239 = vmax.xlane.f32.xlu1 %v938_v41 }
 0x129   :  { %386 = vperm.xlu1 %698, %v339_v44  }
 0x154   :  { %v234_v57 = vpop.xlane.xlu0 %233  ;;  %v218_v58 = vpop.xlane.xlu1 %217 }
 0x155   :  { %v247_v59 = vsub.f32 %v673_v23, %v218_v58  ;;  %v964_v60 = vsub.f32 %v681_v24, %v234_v57 }
 0x157   :  { %v265_v61 = vmul.f32 1.442695, %v247_v59  ;;  %v409_v62 = vsel %vm393_vm1, %v247_v59, 0.0  ;;  %v281_v3 = vmul.f32 1.442695, %v964_v60 }
 0x158   :  { %v214_v63 = vpop.xlane.xlu0 %213  ;;  %v220_v0 = vpop.xlane.xlu1 %219  ;;  %427 = vadd.xlane.f32.xlu1 %v409_v62 }
 0x159   :  { %v245_v1 = vsub.f32 %v150_v25, %v214_v63  ;;  %v966_v2 = vsub.f32 %v674_v27, %v220_v0  ;;  %709 = vpow2.f32 %v265_v61 }
 0x15b   :  { %v261_v4 = vmul.f32 1.442695, %v245_v1  ;;  %v407_v5 = vsel %vm391_vm2, %v245_v1, 0.0  ;;  %v267_v6 = vmul.f32 1.442695, %v966_v2 }
 0x15c   :  { %v230_v7 = vpop.xlane.xlu0 %229  ;;  %v236_v8 = vpop.xlane.xlu1 %235  ;;  %423 = vadd.xlane.f32.xlu0 %v407_v5 }
 0x15d   :  { %711 = vpow2.f32 %v261_v4  ;;  %v253_v9 = vsub.f32 %v896_v26, %v230_v7  ;;  %v256_v39 = vsub.f32 %v898_v28, %v236_v8 }
 0x15e   :  { %713 = vpow2.f32 %v281_v3 }
 0x15f   :  { %v277_v10 = vmul.f32 1.442695, %v253_v9  ;;  %v973_v11 = vsel %vm399_vm3, %v253_v9, 0.0  ;;  %715 = vpow2.f32 %v267_v6  ;;  %v283_v57 = vmul.f32 1.442695, %v256_v39 }
 0x160   :  { %v232_v12 = vpop.xlane.xlu1 %231  ;;  %v216_v13 = vpop.xlane.xlu0 %215 }
 0x161   :  { %717 = vpow2.f32 %v277_v10  ;;  %v976_v14 = vsub.f32 %v906_v31, %v232_v12  ;;  %v246_v15 = vsub.f32 %v900_v29, %v216_v13 }
 0x163   :  { %v279_v16 = vmul.f32 1.442695, %v976_v14  ;;  %v263_v17 = vmul.f32 1.442695, %v246_v15  ;;  %v408_v18 = vsel %vm392_vm4, %v246_v15, 0.0  ;;  %v416_v47 = vsel %vm400_vm10, %v976_v14, 0.0 }
 0x164   :  { %v226_v19 = vpop.xlane.xlu0 %225  ;;  %v228_v20 = vpop.xlane.xlu1 %227  ;;  %425 = vadd.xlane.f32.xlu1 %v408_v18  ;;  %v576_v14 = vsel %vm535_vm14, %v1028_v55, 0.0 }
 0x165   :  { %719 = vpow2.f32 %v279_v16  ;;  %v982_v21 = vsub.f32 %v902_v30, %v226_v19  ;;  %v985_v22 = vsub.f32 %v914_v34, %v228_v20  ;;  %v1042_v16 = vld [vmem:[%s1184_s3 + $0x10] sm:$0xff]  ;;  %v1049_v19 = vld [vmem:[%s1184_s3 + $0x18] sm:$0xff] }
 0x166   :  { %721 = vpow2.f32 %v263_v17  ;;  %v710_v23 = vpop.eup %709  ;;  %v579_v18 = vsel %vm535_vm14, %v1042_v16, 0.0 }
 0x167   :  { %v273_v24 = vmul.f32 1.442695, %v982_v21  ;;  %v275_v25 = vmul.f32 1.442695, %v985_v22  ;;  %297 = vadd.xlane.f32.xlu0 %v710_v23  ;;  %v413_v45 = vsel %vm397_vm8, %v982_v21, 0.0  ;;  %v414_v46 = vsel %vm398_vm9, %v985_v22, 0.0 }
 0x168   :  { %v242_v26 = vpop.xlane.xlu0 %241  ;;  %v989_v27 = vpop.xlane.xlu1 %243  ;;  %v581_v21 = vsel %vm535_vm14, %v1049_v19, 0.0 }
 0x169   :  { %723 = vpow2.f32 %v273_v24  ;;  %v998_v28 = vsub.f32 %v910_v33, %v242_v26  ;;  %v410_v33 = vsel %vm394_vm5, %v966_v2, 0.0  ;;  %v418_v2 = vsel %vm402_vm11, %v256_v39, 0.0  ;;  %v1056_v24 = vld [vmem:[%s1184_s3 + $0x20] sm:$0xff] }
 0x16a   :  { %v712_v29 = vpop.eup %711  ;;  %725 = vpow2.f32 %v275_v25  ;;  %v260_v49 = vsub.f32 %v920_v36, %v989_v27  ;;  %v1033_v36 = vld [vmem:[%s1184_s3 + $0x8] sm:$0xff]  ;;  %v583_v25 = vsel %vm535_vm14, %v1056_v24, 0.0  ;;  %v417_v39 = vsel %vm401_vm15, %v964_v60, 0.0  ;;  %v1096_v60 = vld [vmem:[%s1184_s3 + $0x40] sm:$0xff] }
 0x16b   :  { %v714_v31 = vpop.eup %713  ;;  %293 = vadd.xlane.f32.xlu1 %v712_v29  ;;  %v289_v63 = vmul.f32 1.442695, %v998_v28  ;;  %v577_v15 = vsel %vm535_vm14, %v1033_v36, 0.0  ;;  %v1063_v29 = vld [vmem:[%s1184_s3 + $0x28] sm:$0xff] }
 0x16c   :  { %313 = vadd.xlane.f32.xlu0 %v714_v31  ;;  %v222_v30 = vpop.xlane.xlu0 %221  ;;  %v224_v38 = vpop.xlane.xlu1 %223  ;;  %v291_v13 = vmul.f32 1.442695, %v260_v49  ;;  %v578_v17 = vadd.f32 %v577_v15, %v576_v14  ;;  %v585_v31 = vsel %vm535_vm14, %v1063_v29, 0.0 }
 0x16d   :  { %v716_v34 = vpop.eup %715  ;;  %v249_v40 = vsub.f32 %v908_v32, %v222_v30  ;;  %v250_v42 = vsub.f32 %v924_v37, %v224_v38  ;;  %v1070_v38 = vld [vmem:[%s1184_s3 + $0x30] sm:$0xff] }
 0x16e   :  { %v718_v43 = vpop.eup %717  ;;  %v580_v20 = vadd.f32 %v579_v18, %v578_v17 }
 0x16f   :  { %v269_v44 = vmul.f32 1.442695, %v249_v40  ;;  %v271_v50 = vmul.f32 1.442695, %v250_v42  ;;  %299 = vadd.xlane.f32.xlu1 %v716_v34  ;;  %v411_v4 = vsel %vm395_vm6, %v249_v40, 0.0  ;;  %v412_v6 = vsel %vm396_vm7, %v250_v42, 0.0 }
 0x170   :  { %309 = vadd.xlane.f32.xlu0 %v718_v43  ;;  %v238_v51 = vpop.xlane.xlu0 %237  ;;  %v381_v7 = vpop.permute.xlu1 %380  ;;  %v582_v23 = vadd.f32 %v581_v21, %v580_v20  ;;  %v587_v34 = vsel %vm535_vm14, %v1070_v38, 0.0  ;;  %v1081_v42 = vld [vmem:[%s1184_s3 + $0x38] sm:$0xff] }
 0x171   :  { %727 = vpow2.f32 %v269_v44  ;;  %v995_v58 = vsub.f32 %v916_v35, %v238_v51  ;;  %vm403_vm0 = vcmp.eq.s32.totalorder %v961_v56, %v381_v7  ;;  %v593_v51 = vsel %vm535_vm14, %v1091_v54, 0.0 }
 0x172   :  { %v720_v59 = vpop.eup %719  ;;  %729 = vpow2.f32 %v271_v50  ;;  %v584_v27 = vadd.f32 %v583_v25, %v582_v23 }
 0x173   :  { %v722_v61 = vpop.eup %721  ;;  %311 = vadd.xlane.f32.xlu1 %v720_v59  ;;  %731 = vpow2.f32 %v283_v57  ;;  %v285_v32 = vmul.f32 1.442695, %v995_v58  ;;  %v419_v44 = vsel %vm403_vm0, %v995_v58, 0.0  ;;  %v591_v57 = vsel %vm535_vm14, %v1096_v60, 0.0  ;;  %v1106_v59 = vld [vmem:[%s1184_s3 + $0x58] sm:$0xff] }
 0x174   :  { %295 = vadd.xlane.f32.xlu0 %v722_v61  ;;  %v586_v30 = vadd.f32 %v585_v31, %v584_v27  ;;  %v1111_v61 = vld [vmem:[%s1184_s3 + $0x50] sm:$0xff] }
 0x175   :  { %733 = vpow2.f32 %v285_v32 }
 0x176   :  { %v724_v37 = vpop.eup %723  ;;  %735 = vpow2.f32 %v289_v63  ;;  %v588_v40 = vadd.f32 %v587_v34, %v586_v30  ;;  %v1120_v63 = vld [vmem:[%s1184_s3 + $0x60] sm:$0xff] }
 0x177   :  { %v726_v62 = vpop.eup %725 }
 0x178   :  { %305 = vadd.xlane.f32.xlu0 %v724_v37  ;;  %307 = vadd.xlane.f32.xlu1 %v726_v62  ;;  %v384_v48 = vpop.permute.xlu0 %383  ;;  %v597_v37 = vsel %vm535_vm14, %v1106_v59, 0.0  ;;  %v595_v62 = vsel %vm535_vm14, %v1111_v61, 0.0 }
 0x179   :  { %vm404_vm12 = vcmp.eq.s32.totalorder %v961_v56, %v384_v48 }
 0x17c   :  { %v390_v9 = vpop.permute.xlu0 %389 }
 0x17d   :  { %vm406_vm13 = vcmp.eq.s32.totalorder %v961_v56, %v390_v9 }
 0x17e   :  { %v728_v35 = vpop.eup %727 }
 0x17f   :  { %v730_v0 = vpop.eup %729  ;;  %301 = vadd.xlane.f32.xlu0 %v728_v35 }
 0x180   :  { %303 = vadd.xlane.f32.xlu1 %v730_v0  ;;  %v732_v1 = vpop.eup %731  ;;  %v599_v0 = vsel %vm535_vm14, %v1120_v63, 0.0 }
 0x182   :  { %v734_v3 = vpop.eup %733 }
 0x183   :  { %315 = vadd.xlane.f32.xlu0 %v732_v1  ;;  %v736_v5 = vpop.eup %735 }
 0x184   :  { %429 = vadd.xlane.f32.xlu1 %v410_v33  ;;  %v1127_v33 = vld [vmem:[%s1184_s3 + $0x68] sm:$0xff] }
 0x187   :  { %317 = vadd.xlane.f32.xlu0 %v734_v3  ;;  %v601_v3 = vsel %vm535_vm14, %v1127_v33, 0.0 }
 0x188   :  { %431 = vadd.xlane.f32.xlu1 %v411_v4  ;;  %v1134_v4 = vld [vmem:[%s1184_s3 + $0x70] sm:$0xff] }
 0x18b   :  { %321 = vadd.xlane.f32.xlu0 %v736_v5 }
 0x18c   :  { %433 = vadd.xlane.f32.xlu1 %v412_v6  ;;  %v603_v6 = vsel %vm535_vm14, %v1134_v4, 0.0 }
 0x190   :  { %435 = vadd.xlane.f32.xlu1 %v413_v45  ;;  %v1141_v45 = vld [vmem:[%s1184_s3 + $0x78] sm:$0xff] }
 0x194   :  { %437 = vadd.xlane.f32.xlu1 %v414_v46 }
 0x198   :  { %441 = vadd.xlane.f32.xlu1 %v416_v47  ;;  %v605_v47 = vsel %vm535_vm14, %v1141_v45, 0.0 }
 0x19c   :  { %445 = vadd.xlane.f32.xlu1 %v418_v2 }
 0x1a1   :  { %v240_v8 = vpop.xlane.xlu1 %239 }
 0x1a2   :  { %v258_v10 = vsub.f32 %v938_v41, %v240_v8  ;;  %v422_v41 = vsel %vm406_vm13, %v260_v49, 0.0 }
 0x1a4   :  { %v287_v52 = vmul.f32 1.442695, %v258_v10  ;;  %v420_v12 = vsel %vm404_vm12, %v258_v10, 0.0 }
 0x1a5   :  { %449 = vadd.xlane.f32.xlu1 %v420_v12  ;;  %v387_v43 = vpop.permute.xlu1 %386 }
 0x1a6   :  { %737 = vpow2.f32 %v287_v52  ;;  %vm405_vm1 = vcmp.eq.s32.totalorder %v961_v56, %v387_v43 }
 0x1a7   :  { %739 = vpow2.f32 %v291_v13  ;;  %v421_v58 = vsel %vm405_vm1, %v998_v28, 0.0 }
 0x1a9   :  { %453 = vadd.xlane.f32.xlu1 %v422_v41 }
 0x1b3   :  { %v738_v22 = vpop.eup %737 }
 0x1b4   :  { %319 = vadd.xlane.f32.xlu0 %v738_v22  ;;  %v740_v26 = vpop.eup %739 }
 0x1b8   :  { %323 = vadd.xlane.f32.xlu0 %v740_v26 }
 0x1bc   :  { %439 = vadd.xlane.f32.xlu0 %v973_v11  ;;  %v589_v11 = vsel %vm535_vm14, %v1081_v42, 0.0 }
 0x1bd   :  { %v590_v50 = vadd.f32 %v589_v11, %v588_v40 }
 0x1bf   :  { %v592_v56 = vadd.f32 %v591_v57, %v590_v50 }
 0x1c0   :  { %443 = vadd.xlane.f32.xlu0 %v417_v39 }
 0x1c1   :  { %v594_v32 = vadd.f32 %v593_v51, %v592_v56 }
 0x1c3   :  { %v596_v28 = vadd.f32 %v595_v62, %v594_v32 }
 0x1c4   :  { %447 = vadd.xlane.f32.xlu0 %v419_v44 }
 0x1c5   :  { %v598_v35 = vadd.f32 %v597_v37, %v596_v28 }
 0x1c7   :  { %v600_v1 = vadd.f32 %v599_v0, %v598_v35 }
 0x1c8   :  { %451 = vadd.xlane.f32.xlu0 %v421_v58 }
 0x1c9   :  { %v602_v5 = vadd.f32 %v601_v3, %v600_v1 }
 0x1cb   :  { %v604_v46 = vadd.f32 %v603_v6, %v602_v5 }
 0x1cd   :  { %v606_v2 = vadd.f32 %v605_v47, %v604_v46 }
 0x1cf   :  { %607 = vadd.xlane.f32.xlu1 %v606_v2 }
 0x1e1   :  { %v428_v7 = vpop.xlane.xlu1 %427 }
 0x1e5   :  { %v424_v48 = vpop.xlane.xlu0 %423 }
 0x1ed   :  { %v426_v49 = vpop.xlane.xlu1 %425 }
 0x1f0   :  { %v298_v8 = vpop.xlane.xlu0 %297 }
 0x1f4   :  { %v294_v10 = vpop.xlane.xlu1 %293 }
 0x1f5   :  { %v314_v9 = vpop.xlane.xlu0 %313 }
 0x1f8   :  { %v300_v12 = vpop.xlane.xlu1 %299 }
 0x1f9   :  { %v310_v52 = vpop.xlane.xlu0 %309 }
 0x1fc   :  { %v312_v41 = vpop.xlane.xlu1 %311 }
 0x1fd   :  { %v296_v13 = vpop.xlane.xlu0 %295 }
 0x1fe   :  { %741 = vlog2.f32 %v296_v13 }
 0x1ff   :  { %743 = vlog2.f32 %v294_v10 }
 0x200   :  { %745 = vlog2.f32 %v298_v8 }
 0x201   :  { %v306_v14 = vpop.xlane.xlu0 %305  ;;  %v308_v15 = vpop.xlane.xlu1 %307 }
 0x208   :  { %v302_v17 = vpop.xlane.xlu0 %301 }
 0x209   :  { %v304_v18 = vpop.xlane.xlu1 %303  ;;  %747 = vlog2.f32 %v302_v17 }
 0x20a   :  { %749 = vlog2.f32 %v300_v12 }
 0x20b   :  { %v742_v20 = vpop.eup %741  ;;  %751 = vlog2.f32 %v304_v18 }
 0x20c   :  { %v744_v22 = vpop.eup %743  ;;  %v474_v23 = vmul.f32 0.6931472, %v742_v20  ;;  %753 = vlog2.f32 %v306_v14  ;;  %v316_v43 = vpop.xlane.xlu0 %315 }
 0x20d   :  { %v430_v21 = vpop.xlane.xlu1 %429  ;;  %v472_v25 = vmul.f32 0.6931472, %v744_v22  ;;  %v746_v26 = vpop.eup %745  ;;  %755 = vlog2.f32 %v308_v15 }
 0x20e   :  { %v504_v31 = vsub.f32 %v474_v23, %v426_v49  ;;  %v476_v30 = vmul.f32 0.6931472, %v746_v26  ;;  %757 = vlog2.f32 %v312_v41 }
 0x20f   :  { %v503_v34 = vsub.f32 %v472_v25, %v424_v48  ;;  %759 = vlog2.f32 %v310_v52 }
 0x210   :  { %v520_v40 = vmul.f32 %v504_v31, %v1033_v36  ;;  %v505_v50 = vsub.f32 %v476_v30, %v428_v7  ;;  %v318_v0 = vpop.xlane.xlu0 %317  ;;  %761 = vlog2.f32 %v316_v43 }
 0x211   :  { %v432_v27 = vpop.xlane.xlu1 %431  ;;  %v519_v51 = vmul.f32 %v503_v34, %v1028_v55  ;;  %763 = vlog2.f32 %v314_v9 }
 0x212   :  { %v537_v58 = vsel %vm535_vm14, %v520_v40, 0.0  ;;  %v521_v37 = vmul.f32 %v505_v50, %v1042_v16  ;;  %765 = vlog2.f32 %v318_v0 }
 0x213   :  { %v536_v62 = vsel %vm535_vm14, %v519_v51, 0.0 }
 0x214   :  { %v538_v36 = vadd.f32 %v537_v58, %v536_v62  ;;  %v539_v55 = vsel %vm535_vm14, %v521_v37, 0.0  ;;  %v322_v2 = vpop.xlane.xlu0 %321 }
 0x215   :  { %v434_v44 = vpop.xlane.xlu1 %433 }
 0x216   :  { %v748_v39 = vpop.eup %747  ;;  %v540_v47 = vadd.f32 %v539_v55, %v538_v36 }
 0x217   :  { %v750_v11 = vpop.eup %749  ;;  %v480_v57 = vmul.f32 0.6931472, %v748_v39 }
 0x218   :  { %v478_v56 = vmul.f32 0.6931472, %v750_v11  ;;  %v752_v32 = vpop.eup %751 }
 0x219   :  { %v507_v35 = vsub.f32 %v480_v57, %v432_v27  ;;  %v436_v1 = vpop.xlane.xlu1 %435  ;;  %v482_v3 = vmul.f32 0.6931472, %v752_v32  ;;  %v754_v46 = vpop.eup %753 }
 0x21a   :  { %v506_v28 = vsub.f32 %v478_v56, %v430_v21  ;;  %v484_v49 = vmul.f32 0.6931472, %v754_v46  ;;  %v756_v10 = vpop.eup %755 }
 0x21b   :  { %v523_v6 = vmul.f32 %v507_v35, %v1056_v24  ;;  %v508_v16 = vsub.f32 %v482_v3, %v434_v44  ;;  %v758_v24 = vpop.eup %757  ;;  %v486_v14 = vmul.f32 0.6931472, %v756_v10 }
 0x21c   :  { %v522_v5 = vmul.f32 %v506_v28, %v1049_v19  ;;  %v509_v13 = vsub.f32 %v484_v49, %v436_v1  ;;  %v760_v20 = vpop.eup %759  ;;  %v490_v23 = vmul.f32 0.6931472, %v758_v24 }
 0x21d   :  { %v438_v48 = vpop.xlane.xlu1 %437  ;;  %v543_v8 = vsel %vm535_vm14, %v523_v6, 0.0  ;;  %v524_v12 = vmul.f32 %v508_v16, %v1063_v29  ;;  %v762_v25 = vpop.eup %761  ;;  %v488_v30 = vmul.f32 0.6931472, %v760_v20 }
 0x21e   :  { %v541_v7 = vsel %vm535_vm14, %v522_v5, 0.0  ;;  %v525_v17 = vmul.f32 %v509_v13, %v1070_v38  ;;  %v510_v18 = vsub.f32 %v486_v14, %v438_v48  ;;  %v764_v29 = vpop.eup %763  ;;  %v494_v11 = vmul.f32 0.6931472, %v762_v25 }
 0x21f   :  { %v542_v52 = vadd.f32 %v541_v7, %v540_v47  ;;  %v545_v15 = vsel %vm535_vm14, %v524_v12, 0.0  ;;  %v492_v38 = vmul.f32 0.6931472, %v764_v29  ;;  %v766_v44 = vpop.eup %765 }
 0x220   :  { %v547_v26 = vsel %vm535_vm14, %v525_v17, 0.0  ;;  %v526_v27 = vmul.f32 %v510_v18, %v1081_v42  ;;  %v496_v36 = vmul.f32 0.6931472, %v766_v44 }
 0x221   :  { %v544_v19 = vadd.f32 %v543_v8, %v542_v52  ;;  %v442_v9 = vpop.xlane.xlu1 %441 }
 0x222   :  { %v512_v31 = vsub.f32 %v490_v23, %v442_v9  ;;  %v549_v50 = vsel %vm535_vm14, %v526_v27, 0.0 }
 0x223   :  { %v546_v21 = vadd.f32 %v545_v15, %v544_v19 }
 0x224   :  { %v528_v51 = vmul.f32 %v512_v31, %v1091_v54 }
 0x225   :  { %v548_v34 = vadd.f32 %v547_v26, %v546_v21  ;;  %v446_v39 = vpop.xlane.xlu1 %445 }
 0x226   :  { %v514_v57 = vsub.f32 %v494_v11, %v446_v39  ;;  %v553_v1 = vsel %vm535_vm14, %v528_v51, 0.0 }
 0x227   :  { %v550_v56 = vadd.f32 %v549_v50, %v548_v34 }
 0x228   :  { %v530_v3 = vmul.f32 %v514_v57, %v1106_v59 }
 0x22a   :  { %v557_v7 = vsel %vm535_vm14, %v530_v3, 0.0 }
 0x22e   :  { %v450_v28 = vpop.xlane.xlu1 %449 }
 0x232   :  { %v454_v59 = vpop.xlane.xlu1 %453 }
 0x23d   :  { %v320_v41 = vpop.xlane.xlu0 %319 }
 0x23e   :  { %767 = vlog2.f32 %v320_v41 }
 0x23f   :  { %769 = vlog2.f32 %v322_v2 }
 0x241   :  { %v324_v22 = vpop.xlane.xlu0 %323 }
 0x242   :  { %771 = vlog2.f32 %v324_v22 }
 0x245   :  { %v440_v40 = vpop.xlane.xlu0 %439 }
 0x246   :  { %v511_v43 = vsub.f32 %v488_v30, %v440_v40  ;;  %v617_v40 = vshrl.u32 %v341_v53, 7 }
 0x248   :  { %v527_v58 = vmul.f32 %v511_v43, %v1096_v60  ;;  %vm619_vm2 = vcmp.eq.s32.totalorder %v617_v40, 1  ;;  %vm618_vm3 = vcmp.eq.s32.totalorder %v617_v40, 0 }
 0x249   :  { %v444_v32 = vpop.xlane.xlu0 %443 }
 0x24a   :  { %v551_v42 = vsel %vm535_vm14, %v527_v58, 0.0  ;;  %v513_v37 = vsub.f32 %v492_v38, %v444_v32 }
 0x24b   :  { %v768_v62 = vpop.eup %767  ;;  %v552_v35 = vadd.f32 %v551_v42, %v550_v56 }
 0x24c   :  { %v770_v0 = vpop.eup %769  ;;  %v498_v55 = vmul.f32 0.6931472, %v768_v62  ;;  %v529_v54 = vmul.f32 %v513_v37, %v1111_v61 }
 0x24d   :  { %v554_v5 = vadd.f32 %v553_v1, %v552_v35  ;;  %v448_v6 = vpop.xlane.xlu0 %447  ;;  %v500_v48 = vmul.f32 0.6931472, %v770_v0 }
 0x24e   :  { %v516_v60 = vsub.f32 %v498_v55, %v450_v28  ;;  %v555_v46 = vsel %vm535_vm14, %v529_v54, 0.0  ;;  %v515_v47 = vsub.f32 %v496_v36, %v448_v6 }
 0x24f   :  { %v772_v16 = vpop.eup %771  ;;  %v556_v2 = vadd.f32 %v555_v46, %v554_v5 }
 0x250   :  { %v502_v8 = vmul.f32 0.6931472, %v772_v16  ;;  %v531_v49 = vmul.f32 %v515_v47, %v1120_v63  ;;  %v532_v10 = vmul.f32 %v516_v60, %v1127_v33 }
 0x251   :  { %v558_v52 = vadd.f32 %v557_v7, %v556_v2  ;;  %v452_v12 = vpop.xlane.xlu0 %451 }
 0x252   :  { %v518_v61 = vsub.f32 %v502_v8, %v454_v59  ;;  %v559_v13 = vsel %vm535_vm14, %v531_v49, 0.0  ;;  %v517_v19 = vsub.f32 %v500_v48, %v452_v12  ;;  %v561_v9 = vsel %vm535_vm14, %v532_v10, 0.0 }
 0x253   :  { %v560_v41 = vadd.f32 %v559_v13, %v558_v52 }
 0x254   :  { %v533_v24 = vmul.f32 %v517_v19, %v1134_v4  ;;  %v534_v14 = vmul.f32 %v518_v61, %v1141_v45 }
 0x255   :  { %v562_v15 = vadd.f32 %v561_v9, %v560_v41 }
 0x256   :  { %v563_v17 = vsel %vm535_vm14, %v533_v24, 0.0  ;;  %v565_v33 = vsel %vm535_vm14, %v534_v14, 0.0 }
 0x257   :  { %v564_v63 = vadd.f32 %v563_v17, %v562_v15 }
 0x258   :  { %v608_v20 = vpop.xlane.xlu1 %607 }
 0x259   :  { %v566_v18 = vadd.f32 %v565_v33, %v564_v63  ;;  %v609_v21 = vrot.slane %v608_v20, 4 }
 0x25b   :  { %567 = vadd.xlane.f32.xlu0 %v566_v18  ;;  %v610_v22 = vadd.f32 %v609_v21, %v608_v20 }
 0x25d   :  { %v611_v23 = vrot.slane %v610_v22, 2 }
 0x25f   :  { %v612_v4 = vadd.f32 %v611_v23, %v610_v22 }
 0x261   :  { %v613_v31 = vrot.slane %v612_v4, 1 }
 0x263   :  { %v614_v39 = vadd.f32 %v613_v31, %v612_v4 }
 0x2e4   :  { %v568_v25 = vpop.xlane.xlu0 %567 }
 0x2e5   :  { %v569_v29 = vrot.slane %v568_v25, 4 }
 0x2e7   :  { %v570_v26 = vadd.f32 %v569_v29, %v568_v25 }
 0x2e9   :  { %v571_v27 = vrot.slane %v570_v26, 2 }
 0x2eb   :  { %v572_v45 = vadd.f32 %v571_v27, %v570_v26 }
 0x2ed   :  { %v573_v30 = vrot.slane %v572_v45, 1 }
 0x2ef   :  { %v574_v34 = vadd.f32 %v573_v30, %v572_v45 }
 0x2f1   :  { %691 = vpush %v574_v34 }
 0x2f2   :  { %693 = vpush %v614_v39 }
 0x322   :  { %s692_s3 = spop %691 }
 0x323   :  { %v622_v11 = vstv %s692_s3  ;;  %s694_s16 = spop %693 }
 0x324   :  { %v620_v43 = vstv %s694_s16 }
 0x325   :  { %v621_v38 = vsel %vm619_vm2, %v620_v43, 0.0 }
 0x326   :  { %v623_v44 = vsel %vm618_vm3, %v622_v11, %v621_v38 }
 0x327   :  { %624 = vst [vmem:[#allocation2] sm:$0xff] %v623_v44 }
 0x328   :  { %784 = shalt.err (!%p781_p4)
}
 0x329   :  { %634 = dma.vmem_to_hbm [thread:$0]  %s632_s15, 128, %s1185_s4, [#allocation3]  }
 0x32a   :  { %793 = dma.done.wait [#allocation3], 128  }
 0x32b   :  { %794 = vsyncadd [#allocation3], 4294967168 }
 0x32c   :  { %638 = vsyncpa [#allocation3], 1 }

// kernel: tpu_custom_call.1
= control target key start
LH: loop header
LB: loop body
LE: loop exit
PB: predicated region body
PF: predicated region fallthrough
CT: control target
= control target key end

     0   :  { %vm91_vm0 = vcmask 261120   ;;  %v795_v6 = vmov 0   ;;  %s1181_s0 = inlined_call_operand.vmem [shape: bf16[128,32], index: 0, kind: input, shape index: {}]   ;;  %s1182_s1 = inlined_call_operand.vmem [shape: bf16[32,128], index: 1, kind: input, shape index: {}]   ;;  %s1183_s2 = inlined_call_operand.vmem [shape: s32[128,1], index: 2, kind: input, shape index: {}]   ;;  %s1184_s3 = inlined_call_operand.vmem [shape: f32[128,1], index: 3, kind: input, shape index: {}]   ;;  %s1185_s4 = inlined_call_operand.hbm [shape: f32[1,8,128], index: 4, kind: output, shape index: {}]  }
   0x1   :  { %v699_v0 = vld [vmem:[%s1182_s1 + $0x8] sm:$0xff]   ;;  %v700_v1 = vld [vmem:[%s1182_s1] sm:$0xff]   ;;  %698 = vset.pattern.permute.xlu1 %v795_v6  ;;  %697 = vset.pattern.permute.xlu0 %v795_v6  ;;  %v705_v7 = vld [vmem:[%s1181_s0 + $0x10] sm:$0xff]  }
   0x2   :  { %667 = vmatprep.subr.bf16.mxu0 %v699_v0  ;;  %687 = vmatprep.subr.bf16.mxu1 %v699_v0  ;;  %v701_v2 = vld [vmem:[%s1181_s0] sm:$0xff]   ;;  %v703_v4 = vld [vmem:[%s1181_s0 + $0x8] sm:$0xff]   ;;  %v707_v8 = vld [vmem:[%s1181_s0 + $0x30] sm:$0xff]  }
   0x3   :  { %668 = vmatpush3.bf16.msra.mxu0 %v699_v0  ;;  %689 = vmatpush3.bf16.msra.mxu1 %v699_v0  ;;  %v702_v3 = vld [vmem:[%s1181_s0 + $0x20] sm:$0xff]   ;;  %v704_v5 = vld [vmem:[%s1181_s0 + $0x28] sm:$0xff]   ;;  %v327_v10 = vld [vmem:[%s1183_s2 + $0x10] sm:$0xff] }
   0x4   :  { %669 = vmatprep.subr.bf16.mxu0 %v700_v1  ;;  %688 = vmatprep.subr.bf16.mxu1 %v700_v1  ;;  %v326_v9 = vld [vmem:[%s1183_s2 + $0x8] sm:$0xff]  ;;  %v325_v11 = vld [vmem:[%s1183_s2] sm:$0xff]  ;;  %v706_v12 = vld [vmem:[%s1181_s0 + $0x18] sm:$0xff]  }
   0x5   :  { %671 = vmatprep.mubr.msk.bf16.mxu0 %vm91_vm0, %v701_v2  ;;  %679 = vmatprep.mubr.msk.bf16.mxu1 %vm91_vm0, %v702_v3  ;;  %v708_v13 = vld [vmem:[%s1181_s0 + $0x38] sm:$0xff]  }
   0x6   :  { %347 = vperm.xlu1 %698, %v326_v9   ;;  %344 = vperm.xlu0 %697, %v325_v11  }
   0x7   :  { %670 = vmatpush3.bf16.msra.mxu0 %v700_v1  ;;  %690 = vmatpush3.bf16.msra.mxu1 %v700_v1 }
   0xa   :  { %672 = vmatmul.mubr.msk.bf16.vlgmr.msra.gmra.mxu0 %vm91_vm0, %v703_v4  ;;  %680 = vmatmul.mubr.msk.bf16.vlgmr.msra.gmra.mxu1 %vm91_vm0, %v704_v5 }
   0xb   :  { %675 = vmatprep.mubr.msk.bf16.mxu0 %vm91_vm0, %v705_v7  ;;  %683 = vmatprep.mubr.msk.bf16.mxu1 %vm91_vm0, %v707_v8 }
   0xc   :  { %9 = vsyncpa [#allocation3], 0  ;;  %350 = vperm.xlu1 %698, %v327_v10   ;;  %v334_v14 = vld [vmem:[%s1183_s2 + $0x48] sm:$0xff]  ;;  %v328_v15 = vld [vmem:[%s1183_s2 + $0x18] sm:$0xff]  ;;  %v341_v53 = vlaneseq  ;;  %vm535_vm14 = vcmask 7168   ;;  %s796_s14 = smov [#allocation2]  }
   0xd   :  { %371 = vperm.xlu0 %697, %v334_v14   ;;  %v336_v16 = vld [vmem:[%s1183_s2 + $0x58] sm:$0xff]  ;;  %v329_v17 = vld [vmem:[%s1183_s2 + $0x20] sm:$0xff]  ;;  %v330_v18 = vld [vmem:[%s1183_s2 + $0x28] sm:$0xff]  ;;  %s631_s15 = sshll.u32 %s796_s14, 4  ;;  %s632_s15 = int_to_ptr.vmem [resolvable:$true] %s631_s15 }
   0xe   :  { %v331_v19 = vld [vmem:[%s1183_s2 + $0x30] sm:$0xff]  ;;  %v332_v20 = vld [vmem:[%s1183_s2 + $0x38] sm:$0xff]  ;;  %v333_v21 = vld [vmem:[%s1183_s2 + $0x40] sm:$0xff]  ;;  %v961_v56 = vand.u32 127, %v341_v53  ;;  %s773_s17 = scalar_lea.vmem %s632_s15, 128  ;;  %p778_p1 = scmp.lt.s32.totalorder %s632_s15, %s632_s15 }
   0xf   :  { %v335_v22 = vld [vmem:[%s1183_s2 + $0x50] sm:$0xff]  ;;  %v337_v38 = vld [vmem:[%s1183_s2 + $0x60] sm:$0xff]  ;;  %v338_v39 = vld [vmem:[%s1183_s2 + $0x68] sm:$0xff]  ;;  %p774_p0 = scmp.ne.s32.totalorder %s632_s15, %s773_s17  ;;  %p779_p2 = scmp.lt.s32.totalorder %s773_s17, %s773_s17 }
  0x10   :  { %353 = vperm.xlu1 %698, %v328_v15   ;;  %v340_v40 = vld [vmem:[%s1183_s2 + $0x78] sm:$0xff]  ;;  %v339_v44 = vld [vmem:[%s1183_s2 + $0x70] sm:$0xff] }
  0x11   :  { %377 = vperm.xlu0 %697, %v336_v16   ;;  %p780_p3 = por %p779_p2, %p778_p1 }
  0x12   :  { %676 = vmatmul.mubr.msk.bf16.gmra.mxu0 %vm91_vm0, %v706_v12  ;;  %684 = vmatmul.mubr.msk.bf16.gmra.mxu1 %vm91_vm0, %v708_v13 }
  0x13   :  { %p781_p4 = pnand %p780_p3, %p774_p0 }
  0x14   :  { %356 = vperm.xlu1 %698, %v329_v17  }
  0x18   :  { %359 = vperm.xlu1 %698, %v330_v18  }
  0x1c   :  { %362 = vperm.xlu1 %698, %v331_v19  }
  0x20   :  { %365 = vperm.xlu1 %698, %v332_v20  }
  0x24   :  { %368 = vperm.xlu1 %698, %v333_v21  }
  0x28   :  { %374 = vperm.xlu1 %698, %v335_v22  }
  0x81   :  { %v348_v42 = vpop.permute.xlu1 %347  ;;  %v345_v50 = vpop.permute.xlu0 %344 }
  0x82   :  { %vm391_vm2 = vcmp.eq.s32.totalorder %v961_v56, %v345_v50  ;;  %vm392_vm4 = vcmp.eq.s32.totalorder %v961_v56, %v348_v42 }
  0x87   :  { %v351_v43 = vpop.permute.xlu1 %350 }
  0x88   :  { %v954_v52 = vpop.permute.xlu0 %371  ;;  %vm393_vm1 = vcmp.eq.s32.totalorder %v961_v56, %v351_v43 }
  0x89   :  { %vm400_vm10 = vcmp.eq.s32.totalorder %v961_v56, %v954_v52 }
  0x8b   :  { %v944_v45 = vpop.permute.xlu1 %353 }
  0x8c   :  { %v958_v55 = vpop.permute.xlu0 %377  ;;  %vm394_vm5 = vcmp.eq.s32.totalorder %v961_v56, %v944_v45 }
  0x8d   :  { %vm402_vm11 = vcmp.eq.s32.totalorder %v961_v56, %v958_v55  ;;  %v1028_v55 = vld [vmem:[%s1184_s3] sm:$0xff] }
  0x8f   :  { %v946_v46 = vpop.permute.xlu1 %356 }
  0x90   :  { %vm395_vm6 = vcmp.eq.s32.totalorder %v961_v56, %v946_v46 }
  0x93   :  { %v948_v47 = vpop.permute.xlu1 %359 }
  0x94   :  { %vm396_vm7 = vcmp.eq.s32.totalorder %v961_v56, %v948_v47 }
  0x97   :  { %v950_v48 = vpop.permute.xlu1 %362 }
  0x98   :  { %vm397_vm8 = vcmp.eq.s32.totalorder %v961_v56, %v950_v48 }
  0x9b   :  { %v952_v49 = vpop.permute.xlu1 %365 }
  0x9c   :  { %vm398_vm9 = vcmp.eq.s32.totalorder %v961_v56, %v952_v49 }
  0x9f   :  { %v369_v51 = vpop.permute.xlu1 %368 }
  0xa0   :  { %vm399_vm3 = vcmp.eq.s32.totalorder %v961_v56, %v369_v51 }
  0xa3   :  { %v956_v54 = vpop.permute.xlu1 %374 }
  0xa4   :  { %vm401_vm15 = vcmp.eq.s32.totalorder %v961_v56, %v956_v54  ;;  %v1091_v54 = vld [vmem:[%s1184_s3 + $0x48] sm:$0xff] }
  0xca   :  { %v673_v23 = vpop.f32.mrf.mxu0  ;;  %v681_v24 = vpop.f32.mrf.mxu1 }
  0xcb   :  { %233 = vmax.xlane.f32.xlu0 %v681_v24  ;;  %217 = vmax.xlane.f32.xlu1 %v673_v23 }
  0xcc   :  { %v150_v25 = vpop.f32.mrf.mxu0  ;;  %v896_v26 = vpop.f32.mrf.mxu1 }
  0xce   :  { %v674_v27 = vpop.f32.mrf.mxu0  ;;  %v898_v28 = vpop.f32.mrf.mxu1 }
  0xcf   :  { %213 = vmax.xlane.f32.xlu0 %v150_v25  ;;  %219 = vmax.xlane.f32.xlu1 %v674_v27 }
  0xd0   :  { %v900_v29 = vpop.f32.mrf.mxu0  ;;  %v906_v31 = vpop.f32.mrf.mxu1 }
  0xd2   :  { %v902_v30 = vpop.f32.mrf.mxu0  ;;  %v910_v33 = vpop.f32.mrf.mxu1 }
  0xd3   :  { %229 = vmax.xlane.f32.xlu0 %v896_v26  ;;  %235 = vmax.xlane.f32.xlu1 %v898_v28 }
  0xd4   :  { %v908_v32 = vpop.f32.mrf.mxu0  ;;  %v916_v35 = vpop.f32.mrf.mxu1 }
  0xd6   :  { %v914_v34 = vpop.f32.mrf.mxu0  ;;  %v920_v36 = vpop.f32.mrf.mxu1 }
  0xd7   :  { %231 = vmax.xlane.f32.xlu1 %v906_v31  ;;  %215 = vmax.xlane.f32.xlu0 %v900_v29 }
  0xd8   :  { %v924_v37 = vpop.f32.mrf.mxu0  ;;  %v938_v41 = vpop.f32.mrf.mxu1 }
  0xdb   :  { %225 = vmax.xlane.f32.xlu0 %v902_v30  ;;  %227 = vmax.xlane.f32.xlu1 %v914_v34 }
  0xdf   :  { %241 = vmax.xlane.f32.xlu0 %v910_v33  ;;  %243 = vmax.xlane.f32.xlu1 %v920_v36 }
  0xe3   :  { %221 = vmax.xlane.f32.xlu0 %v908_v32  ;;  %223 = vmax.xlane.f32.xlu1 %v924_v37 }
  0xe7   :  { %237 = vmax.xlane.f32.xlu0 %v916_v35 }
  0xf4   :  { %380 = vperm.xlu1 %698, %v337_v38  }
  0xfd   :  { %383 = vperm.xlu0 %697, %v338_v39  }
 0x101   :  { %389 = vperm.xlu0 %697, %v340_v40  }
 0x118   :  { %239 = vmax.xlane.f32.xlu1 %v938_v41 }
 0x129   :  { %386 = vperm.xlu1 %698, %v339_v44  }
 0x154   :  { %v234_v57 = vpop.xlane.xlu0 %233  ;;  %v218_v58 = vpop.xlane.xlu1 %217 }
 0x155   :  { %v247_v59 = vsub.f32 %v673_v23, %v218_v58  ;;  %v964_v60 = vsub.f32 %v681_v24, %v234_v57 }
 0x157   :  { %v265_v61 = vmul.f32 1.442695, %v247_v59  ;;  %v409_v62 = vsel %vm393_vm1, %v247_v59, 0.0  ;;  %v281_v3 = vmul.f32 1.442695, %v964_v60 }
 0x158   :  { %v214_v63 = vpop.xlane.xlu0 %213  ;;  %v220_v0 = vpop.xlane.xlu1 %219  ;;  %427 = vadd.xlane.f32.xlu1 %v409_v62 }
 0x159   :  { %v245_v1 = vsub.f32 %v150_v25, %v214_v63  ;;  %v966_v2 = vsub.f32 %v674_v27, %v220_v0  ;;  %709 = vpow2.f32 %v265_v61 }
 0x15b   :  { %v261_v4 = vmul.f32 1.442695, %v245_v1  ;;  %v407_v5 = vsel %vm391_vm2, %v245_v1, 0.0  ;;  %v267_v6 = vmul.f32 1.442695, %v966_v2 }
 0x15c   :  { %v230_v7 = vpop.xlane.xlu0 %229  ;;  %v236_v8 = vpop.xlane.xlu1 %235  ;;  %423 = vadd.xlane.f32.xlu0 %v407_v5 }
 0x15d   :  { %711 = vpow2.f32 %v261_v4  ;;  %v253_v9 = vsub.f32 %v896_v26, %v230_v7  ;;  %v256_v39 = vsub.f32 %v898_v28, %v236_v8 }
 0x15e   :  { %713 = vpow2.f32 %v281_v3 }
 0x15f   :  { %v277_v10 = vmul.f32 1.442695, %v253_v9  ;;  %v973_v11 = vsel %vm399_vm3, %v253_v9, 0.0  ;;  %715 = vpow2.f32 %v267_v6  ;;  %v283_v57 = vmul.f32 1.442695, %v256_v39 }
 0x160   :  { %v232_v12 = vpop.xlane.xlu1 %231  ;;  %v216_v13 = vpop.xlane.xlu0 %215 }
 0x161   :  { %717 = vpow2.f32 %v277_v10  ;;  %v976_v14 = vsub.f32 %v906_v31, %v232_v12  ;;  %v246_v15 = vsub.f32 %v900_v29, %v216_v13 }
 0x163   :  { %v279_v16 = vmul.f32 1.442695, %v976_v14  ;;  %v263_v17 = vmul.f32 1.442695, %v246_v15  ;;  %v408_v18 = vsel %vm392_vm4, %v246_v15, 0.0  ;;  %v416_v47 = vsel %vm400_vm10, %v976_v14, 0.0 }
 0x164   :  { %v226_v19 = vpop.xlane.xlu0 %225  ;;  %v228_v20 = vpop.xlane.xlu1 %227  ;;  %425 = vadd.xlane.f32.xlu1 %v408_v18  ;;  %v576_v14 = vsel %vm535_vm14, %v1028_v55, 0.0 }
 0x165   :  { %719 = vpow2.f32 %v279_v16  ;;  %v982_v21 = vsub.f32 %v902_v30, %v226_v19  ;;  %v985_v22 = vsub.f32 %v914_v34, %v228_v20  ;;  %v1042_v16 = vld [vmem:[%s1184_s3 + $0x10] sm:$0xff]  ;;  %v1049_v19 = vld [vmem:[%s1184_s3 + $0x18] sm:$0xff] }
 0x166   :  { %721 = vpow2.f32 %v263_v17  ;;  %v710_v23 = vpop.eup %709  ;;  %v579_v18 = vsel %vm535_vm14, %v1042_v16, 0.0 }
 0x167   :  { %v273_v24 = vmul.f32 1.442695, %v982_v21  ;;  %v275_v25 = vmul.f32 1.442695, %v985_v22  ;;  %297 = vadd.xlane.f32.xlu0 %v710_v23  ;;  %v413_v45 = vsel %vm397_vm8, %v982_v21, 0.0  ;;  %v414_v46 = vsel %vm398_vm9, %v985_v22, 0.0 }
 0x168   :  { %v242_v26 = vpop.xlane.xlu0 %241  ;;  %v989_v27 = vpop.xlane.xlu1 %243  ;;  %v581_v21 = vsel %vm535_vm14, %v1049_v19, 0.0 }
 0x169   :  { %723 = vpow2.f32 %v273_v24  ;;  %v998_v28 = vsub.f32 %v910_v33, %v242_v26  ;;  %v410_v33 = vsel %vm394_vm5, %v966_v2, 0.0  ;;  %v418_v2 = vsel %vm402_vm11, %v256_v39, 0.0  ;;  %v1056_v24 = vld [vmem:[%s1184_s3 + $0x20] sm:$0xff] }
 0x16a   :  { %v712_v29 = vpop.eup %711  ;;  %725 = vpow2.f32 %v275_v25  ;;  %v260_v49 = vsub.f32 %v920_v36, %v989_v27  ;;  %v1033_v36 = vld [vmem:[%s1184_s3 + $0x8] sm:$0xff]  ;;  %v583_v25 = vsel %vm535_vm14, %v1056_v24, 0.0  ;;  %v417_v39 = vsel %vm401_vm15, %v964_v60, 0.0  ;;  %v1096_v60 = vld [vmem:[%s1184_s3 + $0x40] sm:$0xff] }
 0x16b   :  { %v714_v31 = vpop.eup %713  ;;  %293 = vadd.xlane.f32.xlu1 %v712_v29  ;;  %v289_v63 = vmul.f32 1.442695, %v998_v28  ;;  %v577_v15 = vsel %vm535_vm14, %v1033_v36, 0.0  ;;  %v1063_v29 = vld [vmem:[%s1184_s3 + $0x28] sm:$0xff] }
 0x16c   :  { %313 = vadd.xlane.f32.xlu0 %v714_v31  ;;  %v222_v30 = vpop.xlane.xlu0 %221  ;;  %v224_v38 = vpop.xlane.xlu1 %223  ;;  %v291_v13 = vmul.f32 1.442695, %v260_v49  ;;  %v578_v17 = vadd.f32 %v577_v15, %v576_v14  ;;  %v585_v31 = vsel %vm535_vm14, %v1063_v29, 0.0 }
 0x16d   :  { %v716_v34 = vpop.eup %715  ;;  %v249_v40 = vsub.f32 %v908_v32, %v222_v30  ;;  %v250_v42 = vsub.f32 %v924_v37, %v224_v38  ;;  %v1070_v38 = vld [vmem:[%s1184_s3 + $0x30] sm:$0xff] }
 0x16e   :  { %v718_v43 = vpop.eup %717  ;;  %v580_v20 = vadd.f32 %v579_v18, %v578_v17 }
 0x16f   :  { %v269_v44 = vmul.f32 1.442695, %v249_v40  ;;  %v271_v50 = vmul.f32 1.442695, %v250_v42  ;;  %299 = vadd.xlane.f32.xlu1 %v716_v34  ;;  %v411_v4 = vsel %vm395_vm6, %v249_v40, 0.0  ;;  %v412_v6 = vsel %vm396_vm7, %v250_v42, 0.0 }
 0x170   :  { %309 = vadd.xlane.f32.xlu0 %v718_v43  ;;  %v238_v51 = vpop.xlane.xlu0 %237  ;;  %v381_v7 = vpop.permute.xlu1 %380  ;;  %v582_v23 = vadd.f32 %v581_v21, %v580_v20  ;;  %v587_v34 = vsel %vm535_vm14, %v1070_v38, 0.0  ;;  %v1081_v42 = vld [vmem:[%s1184_s3 + $0x38] sm:$0xff] }
 0x171   :  { %727 = vpow2.f32 %v269_v44  ;;  %v995_v58 = vsub.f32 %v916_v35, %v238_v51  ;;  %vm403_vm0 = vcmp.eq.s32.totalorder %v961_v56, %v381_v7  ;;  %v593_v51 = vsel %vm535_vm14, %v1091_v54, 0.0 }
 0x172   :  { %v720_v59 = vpop.eup %719  ;;  %729 = vpow2.f32 %v271_v50  ;;  %v584_v27 = vadd.f32 %v583_v25, %v582_v23 }
 0x173   :  { %v722_v61 = vpop.eup %721  ;;  %311 = vadd.xlane.f32.xlu1 %v720_v59  ;;  %731 = vpow2.f32 %v283_v57  ;;  %v285_v32 = vmul.f32 1.442695, %v995_v58  ;;  %v419_v44 = vsel %vm403_vm0, %v995_v58, 0.0  ;;  %v591_v57 = vsel %vm535_vm14, %v1096_v60, 0.0  ;;  %v1106_v59 = vld [vmem:[%s1184_s3 + $0x58] sm:$0xff] }
 0x174   :  { %295 = vadd.xlane.f32.xlu0 %v722_v61  ;;  %v586_v30 = vadd.f32 %v585_v31, %v584_v27  ;;  %v1111_v61 = vld [vmem:[%s1184_s3 + $0x50] sm:$0xff] }
 0x175   :  { %733 = vpow2.f32 %v285_v32 }
 0x176   :  { %v724_v37 = vpop.eup %723  ;;  %735 = vpow2.f32 %v289_v63  ;;  %v588_v40 = vadd.f32 %v587_v34, %v586_v30  ;;  %v1120_v63 = vld [vmem:[%s1184_s3 + $0x60] sm:$0xff] }
 0x177   :  { %v726_v62 = vpop.eup %725 }
 0x178   :  { %305 = vadd.xlane.f32.xlu0 %v724_v37  ;;  %307 = vadd.xlane.f32.xlu1 %v726_v62  ;;  %v384_v48 = vpop.permute.xlu0 %383  ;;  %v597_v37 = vsel %vm535_vm14, %v1106_v59, 0.0  ;;  %v595_v62 = vsel %vm535_vm14, %v1111_v61, 0.0 }
 0x179   :  { %vm404_vm12 = vcmp.eq.s32.totalorder %v961_v56, %v384_v48 }
 0x17c   :  { %v390_v9 = vpop.permute.xlu0 %389 }
 0x17d   :  { %vm406_vm13 = vcmp.eq.s32.totalorder %v961_v56, %v390_v9 }
 0x17e   :  { %v728_v35 = vpop.eup %727 }
 0x17f   :  { %v730_v0 = vpop.eup %729  ;;  %301 = vadd.xlane.f32.xlu0 %v728_v35 }
 0x180   :  { %303 = vadd.xlane.f32.xlu1 %v730_v0  ;;  %v732_v1 = vpop.eup %731  ;;  %v599_v0 = vsel %vm535_vm14, %v1120_v63, 0.0 }
 0x182   :  { %v734_v3 = vpop.eup %733 }
 0x183   :  { %315 = vadd.xlane.f32.xlu0 %v732_v1  ;;  %v736_v5 = vpop.eup %735 }
 0x184   :  { %429 = vadd.xlane.f32.xlu1 %v410_v33  ;;  %v1127_v33 = vld [vmem:[%s1184_s3 + $0x68] sm:$0xff] }
 0x187   :  { %317 = vadd.xlane.f32.xlu0 %v734_v3  ;;  %v601_v3 = vsel %vm535_vm14, %v1127_v33, 0.0 }
 0x188   :  { %431 = vadd.xlane.f32.xlu1 %v411_v4  ;;  %v1134_v4 = vld [vmem:[%s1184_s3 + $0x70] sm:$0xff] }
 0x18b   :  { %321 = vadd.xlane.f32.xlu0 %v736_v5 }
 0x18c   :  { %433 = vadd.xlane.f32.xlu1 %v412_v6  ;;  %v603_v6 = vsel %vm535_vm14, %v1134_v4, 0.0 }
 0x190   :  { %435 = vadd.xlane.f32.xlu1 %v413_v45  ;;  %v1141_v45 = vld [vmem:[%s1184_s3 + $0x78] sm:$0xff] }
 0x194   :  { %437 = vadd.xlane.f32.xlu1 %v414_v46 }
 0x198   :  { %441 = vadd.xlane.f32.xlu1 %v416_v47  ;;  %v605_v47 = vsel %vm535_vm14, %v1141_v45, 0.0 }
 0x19c   :  { %445 = vadd.xlane.f32.xlu1 %v418_v2 }
 0x1a1   :  { %v240_v8 = vpop.xlane.xlu1 %239 }
 0x1a2   :  { %v258_v10 = vsub.f32 %v938_v41, %v240_v8  ;;  %v422_v41 = vsel %vm406_vm13, %v260_v49, 0.0 }
 0x1a4   :  { %v287_v52 = vmul.f32 1.442695, %v258_v10  ;;  %v420_v12 = vsel %vm404_vm12, %v258_v10, 0.0 }
 0x1a5   :  { %449 = vadd.xlane.f32.xlu1 %v420_v12  ;;  %v387_v43 = vpop.permute.xlu1 %386 }
 0x1a6   :  { %737 = vpow2.f32 %v287_v52  ;;  %vm405_vm1 = vcmp.eq.s32.totalorder %v961_v56, %v387_v43 }
 0x1a7   :  { %739 = vpow2.f32 %v291_v13  ;;  %v421_v58 = vsel %vm405_vm1, %v998_v28, 0.0 }
 0x1a9   :  { %453 = vadd.xlane.f32.xlu1 %v422_v41 }
 0x1b3   :  { %v738_v22 = vpop.eup %737 }
 0x1b4   :  { %319 = vadd.xlane.f32.xlu0 %v738_v22  ;;  %v740_v26 = vpop.eup %739 }
 0x1b8   :  { %323 = vadd.xlane.f32.xlu0 %v740_v26 }
 0x1bc   :  { %439 = vadd.xlane.f32.xlu0 %v973_v11  ;;  %v589_v11 = vsel %vm535_vm14, %v1081_v42, 0.0 }
 0x1bd   :  { %v590_v50 = vadd.f32 %v589_v11, %v588_v40 }
 0x1bf   :  { %v592_v56 = vadd.f32 %v591_v57, %v590_v50 }
 0x1c0   :  { %443 = vadd.xlane.f32.xlu0 %v417_v39 }
 0x1c1   :  { %v594_v32 = vadd.f32 %v593_v51, %v592_v56 }
 0x1c3   :  { %v596_v28 = vadd.f32 %v595_v62, %v594_v32 }
 0x1c4   :  { %447 = vadd.xlane.f32.xlu0 %v419_v44 }
 0x1c5   :  { %v598_v35 = vadd.f32 %v597_v37, %v596_v28 }
 0x1c7   :  { %v600_v1 = vadd.f32 %v599_v0, %v598_v35 }
 0x1c8   :  { %451 = vadd.xlane.f32.xlu0 %v421_v58 }
 0x1c9   :  { %v602_v5 = vadd.f32 %v601_v3, %v600_v1 }
 0x1cb   :  { %v604_v46 = vadd.f32 %v603_v6, %v602_v5 }
 0x1cd   :  { %v606_v2 = vadd.f32 %v605_v47, %v604_v46 }
 0x1cf   :  { %607 = vadd.xlane.f32.xlu1 %v606_v2 }
 0x1e1   :  { %v428_v7 = vpop.xlane.xlu1 %427 }
 0x1e5   :  { %v424_v48 = vpop.xlane.xlu0 %423 }
 0x1ed   :  { %v426_v49 = vpop.xlane.xlu1 %425 }
 0x1f0   :  { %v298_v8 = vpop.xlane.xlu0 %297 }
 0x1f4   :  { %v294_v10 = vpop.xlane.xlu1 %293 }
 0x1f5   :  { %v314_v9 = vpop.xlane.xlu0 %313 }
 0x1f8   :  { %v300_v12 = vpop.xlane.xlu1 %299 }
 0x1f9   :  { %v310_v52 = vpop.xlane.xlu0 %309 }
 0x1fc   :  { %v312_v41 = vpop.xlane.xlu1 %311 }
 0x1fd   :  { %v296_v13 = vpop.xlane.xlu0 %295 }
 0x1fe   :  { %741 = vlog2.f32 %v296_v13 }
 0x1ff   :  { %743 = vlog2.f32 %v294_v10 }
 0x200   :  { %745 = vlog2.f32 %v298_v8 }
 0x201   :  { %v306_v14 = vpop.xlane.xlu0 %305  ;;  %v308_v15 = vpop.xlane.xlu1 %307 }
 0x208   :  { %v302_v17 = vpop.xlane.xlu0 %301 }
 0x209   :  { %v304_v18 = vpop.xlane.xlu1 %303  ;;  %747 = vlog2.f32 %v302_v17 }
 0x20a   :  { %749 = vlog2.f32 %v300_v12 }
 0x20b   :  { %v742_v20 = vpop.eup %741  ;;  %751 = vlog2.f32 %v304_v18 }
 0x20c   :  { %v744_v22 = vpop.eup %743  ;;  %v474_v23 = vmul.f32 0.6931472, %v742_v20  ;;  %753 = vlog2.f32 %v306_v14  ;;  %v316_v43 = vpop.xlane.xlu0 %315 }
 0x20d   :  { %v430_v21 = vpop.xlane.xlu1 %429  ;;  %v472_v25 = vmul.f32 0.6931472, %v744_v22  ;;  %v746_v26 = vpop.eup %745  ;;  %755 = vlog2.f32 %v308_v15 }
 0x20e   :  { %v504_v31 = vsub.f32 %v474_v23, %v426_v49  ;;  %v476_v30 = vmul.f32 0.6931472, %v746_v26  ;;  %757 = vlog2.f32 %v312_v41 }
 0x20f   :  { %v503_v34 = vsub.f32 %v472_v25, %v424_v48  ;;  %759 = vlog2.f32 %v310_v52 }
 0x210   :  { %v520_v40 = vmul.f32 %v504_v31, %v1033_v36  ;;  %v505_v50 = vsub.f32 %v476_v30, %v428_v7  ;;  %v318_v0 = vpop.xlane.xlu0 %317  ;;  %761 = vlog2.f32 %v316_v43 }
 0x211   :  { %v432_v27 = vpop.xlane.xlu1 %431  ;;  %v519_v51 = vmul.f32 %v503_v34, %v1028_v55  ;;  %763 = vlog2.f32 %v314_v9 }
 0x212   :  { %v537_v58 = vsel %vm535_vm14, %v520_v40, 0.0  ;;  %v521_v37 = vmul.f32 %v505_v50, %v1042_v16  ;;  %765 = vlog2.f32 %v318_v0 }
 0x213   :  { %v536_v62 = vsel %vm535_vm14, %v519_v51, 0.0 }
 0x214   :  { %v538_v36 = vadd.f32 %v537_v58, %v536_v62  ;;  %v539_v55 = vsel %vm535_vm14, %v521_v37, 0.0  ;;  %v322_v2 = vpop.xlane.xlu0 %321 }
 0x215   :  { %v434_v44 = vpop.xlane.xlu1 %433 }
 0x216   :  { %v748_v39 = vpop.eup %747  ;;  %v540_v47 = vadd.f32 %v539_v55, %v538_v36 }
 0x217   :  { %v750_v11 = vpop.eup %749  ;;  %v480_v57 = vmul.f32 0.6931472, %v748_v39 }
 0x218   :  { %v478_v56 = vmul.f32 0.6931472, %v750_v11  ;;  %v752_v32 = vpop.eup %751 }
 0x219   :  { %v507_v35 = vsub.f32 %v480_v57, %v432_v27  ;;  %v436_v1 = vpop.xlane.xlu1 %435  ;;  %v482_v3 = vmul.f32 0.6931472, %v752_v32  ;;  %v754_v46 = vpop.eup %753 }
 0x21a   :  { %v506_v28 = vsub.f32 %v478_v56, %v430_v21  ;;  %v484_v49 = vmul.f32 0.6931472, %v754_v46  ;;  %v756_v10 = vpop.eup %755 }
 0x21b   :  { %v523_v6 = vmul.f32 %v507_v35, %v1056_v24  ;;  %v508_v16 = vsub.f32 %v482_v3, %v434_v44  ;;  %v758_v24 = vpop.eup %757  ;;  %v486_v14 = vmul.f32 0.6931472, %v756_v10 }
 0x21c   :  { %v522_v5 = vmul.f32 %v506_v28, %v1049_v19  ;;  %v509_v13 = vsub.f32 %v484_v49, %v436_v1  ;;  %v760_v20 = vpop.eup %759  ;;  %v490_v23 = vmul.f32 0.6931472, %v758_v24 }
 0x21d   :  { %v438_v48 = vpop.xlane.xlu1 %437  ;;  %v543_v8 = vsel %vm535_vm14, %v523_v6, 0.0  ;;  %v524_v12 = vmul.f32 %v508_v16, %v1063_v29  ;;  %v762_v25 = vpop.eup %761  ;;  %v488_v30 = vmul.f32 0.6931472, %v760_v20 }
 0x21e   :  { %v541_v7 = vsel %vm535_vm14, %v522_v5, 0.0  ;;  %v525_v17 = vmul.f32 %v509_v13, %v1070_v38  ;;  %v510_v18 = vsub.f32 %v486_v14, %v438_v48  ;;  %v764_v29 = vpop.eup %763  ;;  %v494_v11 = vmul.f32 0.6931472, %v762_v25 }
 0x21f   :  { %v542_v52 = vadd.f32 %v541_v7, %v540_v47  ;;  %v545_v15 = vsel %vm535_vm14, %v524_v12, 0.0  ;;  %v492_v38 = vmul.f32 0.6931472, %v764_v29  ;;  %v766_v44 = vpop.eup %765 }
 0x220   :  { %v547_v26 = vsel %vm535_vm14, %v525_v17, 0.0  ;;  %v526_v27 = vmul.f32 %v510_v18, %v1081_v42  ;;  %v496_v36 = vmul.f32 0.6931472, %v766_v44 }
 0x221   :  { %v544_v19 = vadd.f32 %v543_v8, %v542_v52  ;;  %v442_v9 = vpop.xlane.xlu1 %441 }
 0x222   :  { %v512_v31 = vsub.f32 %v490_v23, %v442_v9  ;;  %v549_v50 = vsel %vm535_vm14, %v526_v27, 0.0 }
 0x223   :  { %v546_v21 = vadd.f32 %v545_v15, %v544_v19 }
 0x224   :  { %v528_v51 = vmul.f32 %v512_v31, %v1091_v54 }
 0x225   :  { %v548_v34 = vadd.f32 %v547_v26, %v546_v21  ;;  %v446_v39 = vpop.xlane.xlu1 %445 }
 0x226   :  { %v514_v57 = vsub.f32 %v494_v11, %v446_v39  ;;  %v553_v1 = vsel %vm535_vm14, %v528_v51, 0.0 }
 0x227   :  { %v550_v56 = vadd.f32 %v549_v50, %v548_v34 }
 0x228   :  { %v530_v3 = vmul.f32 %v514_v57, %v1106_v59 }
 0x22a   :  { %v557_v7 = vsel %vm535_vm14, %v530_v3, 0.0 }
 0x22e   :  { %v450_v28 = vpop.xlane.xlu1 %449 }
 0x232   :  { %v454_v59 = vpop.xlane.xlu1 %453 }
 0x23d   :  { %v320_v41 = vpop.xlane.xlu0 %319 }
 0x23e   :  { %767 = vlog2.f32 %v320_v41 }
 0x23f   :  { %769 = vlog2.f32 %v322_v2 }
 0x241   :  { %v324_v22 = vpop.xlane.xlu0 %323 }
 0x242   :  { %771 = vlog2.f32 %v324_v22 }
 0x245   :  { %v440_v40 = vpop.xlane.xlu0 %439 }
 0x246   :  { %v511_v43 = vsub.f32 %v488_v30, %v440_v40  ;;  %v617_v40 = vshrl.u32 %v341_v53, 7 }
 0x248   :  { %v527_v58 = vmul.f32 %v511_v43, %v1096_v60  ;;  %vm619_vm2 = vcmp.eq.s32.totalorder %v617_v40, 1  ;;  %vm618_vm3 = vcmp.eq.s32.totalorder %v617_v40, 0 }
 0x249   :  { %v444_v32 = vpop.xlane.xlu0 %443 }
 0x24a   :  { %v551_v42 = vsel %vm535_vm14, %v527_v58, 0.0  ;;  %v513_v37 = vsub.f32 %v492_v38, %v444_v32 }
 0x24b   :  { %v768_v62 = vpop.eup %767  ;;  %v552_v35 = vadd.f32 %v551_v42, %v550_v56 }
 0x24c   :  { %v770_v0 = vpop.eup %769  ;;  %v498_v55 = vmul.f32 0.6931472, %v768_v62  ;;  %v529_v54 = vmul.f32 %v513_v37, %v1111_v61 }
 0x24d   :  { %v554_v5 = vadd.f32 %v553_v1, %v552_v35  ;;  %v448_v6 = vpop.xlane.xlu0 %447  ;;  %v500_v48 = vmul.f32 0.6931472, %v770_v0 }
 0x24e   :  { %v516_v60 = vsub.f32 %v498_v55, %v450_v28  ;;  %v555_v46 = vsel %vm535_vm14, %v529_v54, 0.0  ;;  %v515_v47 = vsub.f32 %v496_v36, %v448_v6 }
 0x24f   :  { %v772_v16 = vpop.eup %771  ;;  %v556_v2 = vadd.f32 %v555_v46, %v554_v5 }
 0x250   :  { %v502_v8 = vmul.f32 0.6931472, %v772_v16  ;;  %v531_v49 = vmul.f32 %v515_v47, %v1120_v63  ;;  %v532_v10 = vmul.f32 %v516_v60, %v1127_v33 }
 0x251   :  { %v558_v52 = vadd.f32 %v557_v7, %v556_v2  ;;  %v452_v12 = vpop.xlane.xlu0 %451 }
 0x252   :  { %v518_v61 = vsub.f32 %v502_v8, %v454_v59  ;;  %v559_v13 = vsel %vm535_vm14, %v531_v49, 0.0  ;;  %v517_v19 = vsub.f32 %v500_v48, %v452_v12  ;;  %v561_v9 = vsel %vm535_vm14, %v532_v10, 0.0 }
 0x253   :  { %v560_v41 = vadd.f32 %v559_v13, %v558_v52 }
 0x254   :  { %v533_v24 = vmul.f32 %v517_v19, %v1134_v4  ;;  %v534_v14 = vmul.f32 %v518_v61, %v1141_v45 }
 0x255   :  { %v562_v15 = vadd.f32 %v561_v9, %v560_v41 }
 0x256   :  { %v563_v17 = vsel %vm535_vm14, %v533_v24, 0.0  ;;  %v565_v33 = vsel %vm535_vm14, %v534_v14, 0.0 }
 0x257   :  { %v564_v63 = vadd.f32 %v563_v17, %v562_v15 }
 0x258   :  { %v608_v20 = vpop.xlane.xlu1 %607 }
 0x259   :  { %v566_v18 = vadd.f32 %v565_v33, %v564_v63  ;;  %v609_v21 = vrot.slane %v608_v20, 4 }
 0x25b   :  { %567 = vadd.xlane.f32.xlu0 %v566_v18  ;;  %v610_v22 = vadd.f32 %v609_v21, %v608_v20 }
 0x25d   :  { %v611_v23 = vrot.slane %v610_v22, 2 }
 0x25f   :  { %v612_v4 = vadd.f32 %v611_v23, %v610_v22 }
 0x261   :  { %v613_v31 = vrot.slane %v612_v4, 1 }
 0x263   :  { %v614_v39 = vadd.f32 %v613_v31, %v612_v4 }
 0x2e4   :  { %v568_v25 = vpop.xlane.xlu0 %567 }
 0x2e5   :  { %v569_v29 = vrot.slane %v568_v25, 4 }
 0x2e7   :  { %v570_v26 = vadd.f32 %v569_v29, %v568_v25 }
 0x2e9   :  { %v571_v27 = vrot.slane %v570_v26, 2 }
 0x2eb   :  { %v572_v45 = vadd.f32 %v571_v27, %v570_v26 }
 0x2ed   :  { %v573_v30 = vrot.slane %v572_v45, 1 }
 0x2ef   :  { %v574_v34 = vadd.f32 %v573_v30, %v572_v45 }
 0x2f1   :  { %691 = vpush %v574_v34 }
 0x2f2   :  { %693 = vpush %v614_v39 }
 0x322   :  { %s692_s3 = spop %691 }
 0x323   :  { %v622_v11 = vstv %s692_s3  ;;  %s694_s16 = spop %693 }
 0x324   :  { %v620_v43 = vstv %s694_s16 }
 0x325   :  { %v621_v38 = vsel %vm619_vm2, %v620_v43, 0.0 }
 0x326   :  { %v623_v44 = vsel %vm618_vm3, %v622_v11, %v621_v38 }
 0x327   :  { %624 = vst [vmem:[#allocation2] sm:$0xff] %v623_v44 }
 0x328   :  { %784 = shalt.err (!%p781_p4)
}
 0x329   :  { %634 = dma.vmem_to_hbm [thread:$0]  %s632_s15, 128, %s1185_s4, [#allocation3]  }
 0x32a   :  { %793 = dma.done.wait [#allocation3], 128  }
 0x32b   :  { %794 = vsyncadd [#allocation3], 4294967168 }
 0x32c   :  { %638 = vsyncpa [#allocation3], 1 }

</bundles_post_ra>
